<compile_context>
chip_gen: v7x
topology: tpu7x:2x2x1
jax: 0.10.0
libtpu: 0.0.40
codegen_flags: <defaults>
</compile_context>

<pallas_src>
import math

import jax
import jax.numpy as jnp
from jax.experimental import pallas as pl
from jax.experimental.pallas import tpu as pltpu

# ---- small, module-consistent hyperparameters ------------------------------
INPUT_DIM = 4
EMBED_DIM = 32
NUM_HEADS = 4
NUM_LAYERS = 2
# TODO(synk): nn.TransformerEncoderLayer default dim_feedforward=2048; scaled
# down to 4*embed_dim for this synthetic small-shape kernel.
FFN_DIM = 4 * EMBED_DIM
BATCH = 2
SEQ = 8
LN_EPS = 1e-5
HEAD_DIM = EMBED_DIM // NUM_HEADS
OUT_PAD = 128   # lane-dense output width; first INPUT_DIM lanes are real

# packed per-layer vector indices (vecs array of shape (L, 9, E))
_B_Q, _B_K, _B_V, _B_O, _LN1G, _LN1B, _LN2G, _LN2B, _B_FF2 = range(9)


def _layer_norm(x, g, b):
    # two-pass LN (mu, then E[(x-mu)^2]) -- safer than E[x^2]-mu^2
    mu = jnp.mean(x, axis=-1, keepdims=True)
    d = x - mu
    var = jnp.mean(d * d, axis=-1, keepdims=True)
    return d * jax.lax.rsqrt(var + LN_EPS) * g + b


# ---- Pallas kernel: full forward pass, whole batch in one step --------------
def _tst_kernel(x_ref, pe_ref, mask_ref, w_in_ref, w_qkv_ref, w_o_ref, vecs_ref,
                w_ff1_ref, b_ff1_ref, w_ff2_ref, w_out_ref, b_out_ref,
                o_ref, scr_ref):
    scale = 1.0 / math.sqrt(HEAD_DIM)

    # input_proj + (pos-enc + input bias, folded in pack_params)
    h = jnp.dot(x_ref[...], w_in_ref[...], preferred_element_type=jnp.float32)
    h = h + pe_ref[...]                                           # (BS, E)

    mask = mask_ref[...]        # (BS, BS) additive block-diagonal batch mask

    for l in range(NUM_LAYERS):
        vecs = vecs_ref[l]                                        # (9, E)

        # ---- QKV: plain (BS,E)@(E,E) matmuls, heads stay packed on E lanes --
        q = jnp.dot(h, w_qkv_ref[3 * l + 0],
                    preferred_element_type=jnp.float32) + vecs[_B_Q:_B_Q + 1, :]
        k = jnp.dot(h, w_qkv_ref[3 * l + 1],
                    preferred_element_type=jnp.float32) + vecs[_B_K:_B_K + 1, :]
        v = jnp.dot(h, w_qkv_ref[3 * l + 2],
                    preferred_element_type=jnp.float32) + vecs[_B_V:_B_V + 1, :]

        # ---- head split via a tiny VMEM scratch round-trip ------------------
        # (ref-sliced loads avoid value reshape/transpose relayouts)
        scr_ref[0, :, :] = q
        scr_ref[1, :, :] = k
        scr_ref[2, :, :] = v

        def _heads(i):
            return jnp.stack(
                [scr_ref[i, :, hd * HEAD_DIM:(hd + 1) * HEAD_DIM]
                 for hd in range(NUM_HEADS)], axis=0)             # (H, BS, dh)

        qh, kh, vh = _heads(0), _heads(1), _heads(2)

        # ---- attention: one masked (H, BS, BS) score matrix, one softmax ----
        s = jnp.einsum('hqd,hkd->hqk', qh, kh,
                       preferred_element_type=jnp.float32) * scale
        s = s + mask                                              # block-diag batch mask
        s = s - jnp.max(s, axis=-1, keepdims=True)
        p = jnp.exp(s)
        p = p * pl.reciprocal(jnp.sum(p, axis=-1, keepdims=True), approx=True)
        a = jnp.einsum('hqk,hkd->hqd', p, vh,
                       preferred_element_type=jnp.float32)        # (H, BS, dh)

        # ---- merge heads back to (BS, E); one dense (E,E) output projection -
        for hd in range(NUM_HEADS):
            scr_ref[0, :, hd * HEAD_DIM:(hd + 1) * HEAD_DIM] = a[hd]
        attn = jnp.dot(scr_ref[0, :, :], w_o_ref[l],
                       preferred_element_type=jnp.float32) + vecs[_B_O:_B_O + 1, :]

        h = _layer_norm(h + attn,
                        vecs[_LN1G:_LN1G + 1, :], vecs[_LN1B:_LN1B + 1, :])

        # ---- feed-forward (relu), lane-dense 128-wide hidden -----------------
        ff = jnp.dot(h, w_ff1_ref[l], preferred_element_type=jnp.float32)
        ff = jnp.maximum(ff + b_ff1_ref[l:l + 1, :], 0.0)
        ff = jnp.dot(ff, w_ff2_ref[l], preferred_element_type=jnp.float32)
        ff = ff + vecs[_B_FF2:_B_FF2 + 1, :]

        h = _layer_norm(h + ff,
                        vecs[_LN2G:_LN2G + 1, :], vecs[_LN2B:_LN2B + 1, :])

    # output_proj, stored as one lane-dense (BS, 128) slab
    out = jnp.dot(h, w_out_ref[...], preferred_element_type=jnp.float32)
    o_ref[...] = out + b_out_ref[...]


# ---- wrapper ----------------------------------------------------------------
def _full_spec(shape):
    nd = len(shape)
    return pl.BlockSpec(shape, lambda i, _nd=nd: (0,) * _nd)


def pack_params(params, pe, batch):
    """One-time parameter repacking (hoisted out of the per-call path)."""
    L, E = NUM_LAYERS, EMBED_DIM
    S = pe.shape[0]
    Din = params["w_in"].shape[0]
    ntok = batch * S

    tok_blk = jnp.arange(ntok, dtype=jnp.int32) // S
    mask = jnp.where(tok_blk[:, None] == tok_blk[None, :], 0.0, -1e30
                     ).astype(jnp.float32)                        # (BS, BS)

    return {
        "pe_bin": jnp.tile(pe + params["b_in"][None, :], (batch, 1)),  # (BS, E)
        "mask": mask,
        "w_in": params["w_in"],                                        # (Din, E)
        "w_qkv": jnp.stack([params["w_q"], params["w_k"], params["w_v"]],
                           axis=1).reshape(3 * L, E, E),               # (3L, E, E)
        "w_o": params["w_o"],                                          # (L, E, E)
        "vecs": jnp.stack([params["b_q"], params["b_k"], params["b_v"],
                           params["b_o"], params["ln1_g"], params["ln1_b"],
                           params["ln2_g"], params["ln2_b"], params["b_ff2"]],
                          axis=1),                                     # (L, 9, E)
        "w_ff1": params["w_ff1"],
        "b_ff1": params["b_ff1"],
        "w_ff2": params["w_ff2"],
        "w_out": jnp.zeros((E, OUT_PAD), jnp.float32).at[:, :Din].set(params["w_out"]),
        "b_out": jnp.zeros((1, OUT_PAD), jnp.float32).at[0, :Din].set(params["b_out"]),
    }


def time_series_transformer(x, packed):
    B, S, Din = x.shape
    ntok = B * S
    x2 = x.reshape(ntok, Din)

    operands = (x2, packed["pe_bin"], packed["mask"], packed["w_in"],
                packed["w_qkv"], packed["w_o"], packed["vecs"],
                packed["w_ff1"], packed["b_ff1"], packed["w_ff2"],
                packed["w_out"], packed["b_out"])

    out = pl.pallas_call(
        _tst_kernel,
        out_shape=jax.ShapeDtypeStruct((ntok, OUT_PAD), jnp.float32),
        grid_spec=pltpu.PrefetchScalarGridSpec(
            num_scalar_prefetch=0,
            grid=(1,),
            in_specs=[_full_spec(op.shape) for op in operands],
            out_specs=_full_spec((ntok, OUT_PAD)),
            scratch_shapes=[pltpu.VMEM((3, ntok, EMBED_DIM), jnp.float32)],
        ),
        compiler_params=pltpu.CompilerParams(
            dimension_semantics=("arbitrary",)),
    )(*operands)

    return out[:, :Din].reshape(B, S, Din)


# ---- deterministic parameters & positional encoding -------------------------
def make_params(key):
    keys = iter(jax.random.split(key, 16))
    s = 0.05
    L, E, F, Din = NUM_LAYERS, EMBED_DIM, FFN_DIM, INPUT_DIM
    p = {
        "w_in": s * jax.random.normal(next(keys), (Din, E), jnp.float32),
        "b_in": s * jax.random.normal(next(keys), (E,), jnp.float32),
        "w_q": s * jax.random.normal(next(keys), (L, E, E), jnp.float32),
        "b_q": s * jax.random.normal(next(keys), (L, E), jnp.float32),
        "w_k": s * jax.random.normal(next(keys), (L, E, E), jnp.float32),
        "b_k": s * jax.random.normal(next(keys), (L, E), jnp.float32),
        "w_v": s * jax.random.normal(next(keys), (L, E, E), jnp.float32),
        "b_v": s * jax.random.normal(next(keys), (L, E), jnp.float32),
        "w_o": s * jax.random.normal(next(keys), (L, E, E), jnp.float32),
        "b_o": s * jax.random.normal(next(keys), (L, E), jnp.float32),
        "ln1_g": jnp.ones((L, E), jnp.float32),
        "ln1_b": jnp.zeros((L, E), jnp.float32),
        "ln2_g": jnp.ones((L, E), jnp.float32),
        "ln2_b": jnp.zeros((L, E), jnp.float32),
        "w_ff1": s * jax.random.normal(next(keys), (L, E, F), jnp.float32),
        "b_ff1": s * jax.random.normal(next(keys), (L, F), jnp.float32),
        "w_ff2": s * jax.random.normal(next(keys), (L, F, E), jnp.float32),
        "b_ff2": s * jax.random.normal(next(keys), (L, E), jnp.float32),
        "w_out": s * jax.random.normal(next(keys), (E, Din), jnp.float32),
        "b_out": s * jax.random.normal(next(keys), (Din,), jnp.float32),
    }
    return p


def make_pos_encoding(seq, dim):
    pos = jnp.arange(seq, dtype=jnp.float32)[:, None]
    div = jnp.exp(jnp.arange(0, dim, 2, dtype=jnp.float32) * (-math.log(10000.0) / dim))
    pe = jnp.zeros((seq, dim), jnp.float32)
    pe = pe.at[:, 0::2].set(jnp.sin(pos * div))
    pe = pe.at[:, 1::2].set(jnp.cos(pos * div))
    return pe


# ---- pure-JAX reference (same math, unpacked params) -------------------------
def ref_forward(x, params, pe):
    B, S, _ = x.shape
    h = x @ params["w_in"] + params["b_in"]
    h = h + pe[None]
    for l in range(NUM_LAYERS):
        q = h @ params["w_q"][l] + params["b_q"][l]
        k = h @ params["w_k"][l] + params["b_k"][l]
        v = h @ params["w_v"][l] + params["b_v"][l]

        def split_heads(t):
            return t.reshape(B, S, NUM_HEADS, HEAD_DIM).transpose(0, 2, 1, 3)

        qh, kh, vh = map(split_heads, (q, k, v))
        s = jnp.einsum("bhqd,bhkd->bhqk", qh, kh) / math.sqrt(HEAD_DIM)
        p = jax.nn.softmax(s, axis=-1)
        a = jnp.einsum("bhqk,bhkd->bhqd", p, vh)
        a = a.transpose(0, 2, 1, 3).reshape(B, S, EMBED_DIM)
        a = a @ params["w_o"][l] + params["b_o"][l]
        h = _layer_norm(h + a, params["ln1_g"][l], params["ln1_b"][l])
        ff = jnp.maximum(h @ params["w_ff1"][l] + params["b_ff1"][l], 0.0)
        ff = ff @ params["w_ff2"][l] + params["b_ff2"][l]
        h = _layer_norm(h + ff, params["ln2_g"][l], params["ln2_b"][l])
    return h @ params["w_out"] + params["b_out"]


if __name__ == "__main__":
    key = jax.random.PRNGKey(0)
    kx, kp = jax.random.split(key)
    x = jax.random.normal(kx, (BATCH, SEQ, INPUT_DIM), jnp.float32)
    params = make_params(kp)
    pe = make_pos_encoding(SEQ, EMBED_DIM)

    packed = pack_params(params, pe, BATCH)        # one-time repack (hoisted)
    fwd = jax.jit(time_series_transformer)
    out = jax.block_until_ready(fwd(x, packed))

    ref = ref_forward(x, params, pe)
    assert out.shape == (BATCH, SEQ, INPUT_DIM)
    assert jnp.allclose(out, ref, atol=1e-3, rtol=1e-3), \
        f"max abs diff {jnp.max(jnp.abs(out - ref))}"

    print("KERNEL_OK")
</pallas_src>

<mosaic_0001>
module attributes {stable_mosaic.version = 11 : i64} {
  func.func @_tst_kernel(%arg0: i32, %arg1: memref<16x4xf32, #tpu.memory_space<vmem>>, %arg2: memref<16x32xf32, #tpu.memory_space<vmem>>, %arg3: memref<16x16xf32, #tpu.memory_space<vmem>>, %arg4: memref<4x32xf32, #tpu.memory_space<vmem>>, %arg5: memref<6x32x32xf32, #tpu.memory_space<vmem>>, %arg6: memref<2x32x32xf32, #tpu.memory_space<vmem>>, %arg7: memref<2x9x32xf32, #tpu.memory_space<vmem>>, %arg8: memref<2x32x128xf32, #tpu.memory_space<vmem>>, %arg9: memref<2x128xf32, #tpu.memory_space<vmem>>, %arg10: memref<2x128x32xf32, #tpu.memory_space<vmem>>, %arg11: memref<32x128xf32, #tpu.memory_space<vmem>>, %arg12: memref<1x128xf32, #tpu.memory_space<vmem>>, %arg13: memref<16x128xf32, #tpu.memory_space<vmem>>, %arg14: memref<3x16x32xf32, #tpu.memory_space<vmem>>) attributes {dimension_semantics = [#tpu.dimension_semantics<arbitrary>], iteration_bounds = array<i64: 1>, scalar_prefetch = 0 : i64, scratch_operands = 1 : i64, tpu.core_type = #tpu.core_type<tc>, window_params = [{pipeline_mode = #tpu.pipeline_mode<synchronous>, transform_indices = @transform_0, window_bounds = array<i64: 16, 4>}, {pipeline_mode = #tpu.pipeline_mode<synchronous>, transform_indices = @transform_1, window_bounds = array<i64: 16, 32>}, {pipeline_mode = #tpu.pipeline_mode<synchronous>, transform_indices = @transform_2, window_bounds = array<i64: 16, 16>}, {pipeline_mode = #tpu.pipeline_mode<synchronous>, transform_indices = @transform_3, window_bounds = array<i64: 4, 32>}, {pipeline_mode = #tpu.pipeline_mode<synchronous>, transform_indices = @transform_4, window_bounds = array<i64: 6, 32, 32>}, {pipeline_mode = #tpu.pipeline_mode<synchronous>, transform_indices = @transform_5, window_bounds = array<i64: 2, 32, 32>}, {pipeline_mode = #tpu.pipeline_mode<synchronous>, transform_indices = @transform_6, window_bounds = array<i64: 2, 9, 32>}, {pipeline_mode = #tpu.pipeline_mode<synchronous>, transform_indices = @transform_7, window_bounds = array<i64: 2, 32, 128>}, {pipeline_mode = #tpu.pipeline_mode<synchronous>, transform_indices = @transform_8, window_bounds = array<i64: 2, 128>}, {pipeline_mode = #tpu.pipeline_mode<synchronous>, transform_indices = @transform_9, window_bounds = array<i64: 2, 128, 32>}, {pipeline_mode = #tpu.pipeline_mode<synchronous>, transform_indices = @transform_10, window_bounds = array<i64: 32, 128>}, {pipeline_mode = #tpu.pipeline_mode<synchronous>, transform_indices = @transform_11, window_bounds = array<i64: 1, 128>}, {pipeline_mode = #tpu.pipeline_mode<synchronous>, transform_indices = @transform_12, window_bounds = array<i64: 16, 128>}]} {
    %c0 = arith.constant 0 : index
    %c0_0 = arith.constant 0 : index
    %0 = vector.load %arg1[%c0, %c0_0] : memref<16x4xf32, #tpu.memory_space<vmem>>, vector<16x4xf32>
    %c0_1 = arith.constant 0 : index
    %c0_2 = arith.constant 0 : index
    %1 = vector.load %arg4[%c0_1, %c0_2] : memref<4x32xf32, #tpu.memory_space<vmem>>, vector<4x32xf32>
    %cst = arith.constant dense<0.000000e+00> : vector<16x32xf32>
    %2 = tpu.matmul %0, %1, %cst {dimension_numbers = #tpu.dot_dimension_numbers<[1], [0], [0], [1], [0, 0, 1, 1], [], []>} : vector<16x4xf32>, vector<4x32xf32>, vector<16x32xf32> -> vector<16x32xf32>
    %c0_3 = arith.constant 0 : index
    %c0_4 = arith.constant 0 : index
    %3 = vector.load %arg2[%c0_3, %c0_4] : memref<16x32xf32, #tpu.memory_space<vmem>>, vector<16x32xf32>
    %4 = arith.addf %2, %3 : vector<16x32xf32>
    %c0_5 = arith.constant 0 : index
    %c0_6 = arith.constant 0 : index
    %5 = vector.load %arg3[%c0_5, %c0_6] : memref<16x16xf32, #tpu.memory_space<vmem>>, vector<16x16xf32>
    %c0_7 = arith.constant 0 : index
    %c0_8 = arith.constant 0 : index
    %c0_9 = arith.constant 0 : index
    %6 = vector.load %arg7[%c0_7, %c0_8, %c0_9] : memref<2x9x32xf32, #tpu.memory_space<vmem>>, vector<1x9x32xf32>
    %7 = vector.shape_cast %6 : vector<1x9x32xf32> to vector<9x32xf32>
    %c0_10 = arith.constant 0 : index
    %c0_11 = arith.constant 0 : index
    %c0_12 = arith.constant 0 : index
    %8 = vector.load %arg5[%c0_10, %c0_11, %c0_12] : memref<6x32x32xf32, #tpu.memory_space<vmem>>, vector<1x32x32xf32>
    %9 = vector.shape_cast %8 : vector<1x32x32xf32> to vector<32x32xf32>
    %cst_13 = arith.constant dense<0.000000e+00> : vector<16x32xf32>
    %10 = tpu.matmul %4, %9, %cst_13 {dimension_numbers = #tpu.dot_dimension_numbers<[1], [0], [0], [1], [0, 0, 1, 1], [], []>} : vector<16x32xf32>, vector<32x32xf32>, vector<16x32xf32> -> vector<16x32xf32>
    %11 = vector.extract_strided_slice %7 {offsets = [0, 0], sizes = [1, 32], strides = [1, 1]} : vector<9x32xf32> to vector<1x32xf32>
    %12 = vector.broadcast %11 : vector<1x32xf32> to vector<16x32xf32>
    %13 = arith.addf %10, %12 : vector<16x32xf32>
    %c1 = arith.constant 1 : index
    %c0_14 = arith.constant 0 : index
    %c0_15 = arith.constant 0 : index
    %14 = vector.load %arg5[%c1, %c0_14, %c0_15] : memref<6x32x32xf32, #tpu.memory_space<vmem>>, vector<1x32x32xf32>
    %15 = vector.shape_cast %14 : vector<1x32x32xf32> to vector<32x32xf32>
    %cst_16 = arith.constant dense<0.000000e+00> : vector<16x32xf32>
    %16 = tpu.matmul %4, %15, %cst_16 {dimension_numbers = #tpu.dot_dimension_numbers<[1], [0], [0], [1], [0, 0, 1, 1], [], []>} : vector<16x32xf32>, vector<32x32xf32>, vector<16x32xf32> -> vector<16x32xf32>
    %17 = vector.extract_strided_slice %7 {offsets = [1, 0], sizes = [1, 32], strides = [1, 1]} : vector<9x32xf32> to vector<1x32xf32>
    %18 = vector.broadcast %17 : vector<1x32xf32> to vector<16x32xf32>
    %19 = arith.addf %16, %18 : vector<16x32xf32>
    %c2 = arith.constant 2 : index
    %c0_17 = arith.constant 0 : index
    %c0_18 = arith.constant 0 : index
    %20 = vector.load %arg5[%c2, %c0_17, %c0_18] : memref<6x32x32xf32, #tpu.memory_space<vmem>>, vector<1x32x32xf32>
    %21 = vector.shape_cast %20 : vector<1x32x32xf32> to vector<32x32xf32>
    %cst_19 = arith.constant dense<0.000000e+00> : vector<16x32xf32>
    %22 = tpu.matmul %4, %21, %cst_19 {dimension_numbers = #tpu.dot_dimension_numbers<[1], [0], [0], [1], [0, 0, 1, 1], [], []>} : vector<16x32xf32>, vector<32x32xf32>, vector<16x32xf32> -> vector<16x32xf32>
    %23 = vector.extract_strided_slice %7 {offsets = [2, 0], sizes = [1, 32], strides = [1, 1]} : vector<9x32xf32> to vector<1x32xf32>
    %24 = vector.broadcast %23 : vector<1x32xf32> to vector<16x32xf32>
    %25 = arith.addf %22, %24 : vector<16x32xf32>
    %c0_20 = arith.constant 0 : index
    %c0_21 = arith.constant 0 : index
    %c0_22 = arith.constant 0 : index
    %26 = vector.load %arg14[%c0_20, %c0_21, %c0_22] : memref<3x16x32xf32, #tpu.memory_space<vmem>>, vector<1x16x32xf32>
    %27 = vector.shape_cast %26 : vector<1x16x32xf32> to vector<16x32xf32>
    %28 = vector.shape_cast %13 : vector<16x32xf32> to vector<1x16x32xf32>
    tpu.vector_store %arg14[%c0_20, %c0_21, %c0_22], %28 {strides = array<i32>} : memref<3x16x32xf32, #tpu.memory_space<vmem>>, vector<1x16x32xf32>,
    %c1_23 = arith.constant 1 : index
    %c0_24 = arith.constant 0 : index
    %c0_25 = arith.constant 0 : index
    %29 = vector.load %arg14[%c1_23, %c0_24, %c0_25] : memref<3x16x32xf32, #tpu.memory_space<vmem>>, vector<1x16x32xf32>
    %30 = vector.shape_cast %29 : vector<1x16x32xf32> to vector<16x32xf32>
    %31 = vector.shape_cast %19 : vector<16x32xf32> to vector<1x16x32xf32>
    tpu.vector_store %arg14[%c1_23, %c0_24, %c0_25], %31 {strides = array<i32>} : memref<3x16x32xf32, #tpu.memory_space<vmem>>, vector<1x16x32xf32>,
    %c2_26 = arith.constant 2 : index
    %c0_27 = arith.constant 0 : index
    %c0_28 = arith.constant 0 : index
    %32 = vector.load %arg14[%c2_26, %c0_27, %c0_28] : memref<3x16x32xf32, #tpu.memory_space<vmem>>, vector<1x16x32xf32>
    %33 = vector.shape_cast %32 : vector<1x16x32xf32> to vector<16x32xf32>
    %34 = vector.shape_cast %25 : vector<16x32xf32> to vector<1x16x32xf32>
    tpu.vector_store %arg14[%c2_26, %c0_27, %c0_28], %34 {strides = array<i32>} : memref<3x16x32xf32, #tpu.memory_space<vmem>>, vector<1x16x32xf32>,
    %c0_29 = arith.constant 0 : index
    %c0_30 = arith.constant 0 : index
    %c0_31 = arith.constant 0 : index
    %35 = vector.load %arg14[%c0_29, %c0_30, %c0_31] : memref<3x16x32xf32, #tpu.memory_space<vmem>>, vector<1x16x8xf32>
    %36 = vector.shape_cast %35 : vector<1x16x8xf32> to vector<16x8xf32>
    %c0_32 = arith.constant 0 : index
    %c0_33 = arith.constant 0 : index
    %c8 = arith.constant 8 : index
    %37 = vector.load %arg14[%c0_32, %c0_33, %c8] : memref<3x16x32xf32, #tpu.memory_space<vmem>>, vector<1x16x8xf32>
    %38 = vector.shape_cast %37 : vector<1x16x8xf32> to vector<16x8xf32>
    %c0_34 = arith.constant 0 : index
    %c0_35 = arith.constant 0 : index
    %c16 = arith.constant 16 : index
    %39 = vector.load %arg14[%c0_34, %c0_35, %c16] : memref<3x16x32xf32, #tpu.memory_space<vmem>>, vector<1x16x8xf32>
    %40 = vector.shape_cast %39 : vector<1x16x8xf32> to vector<16x8xf32>
    %c0_36 = arith.constant 0 : index
    %c0_37 = arith.constant 0 : index
    %c24 = arith.constant 24 : index
    %41 = vector.load %arg14[%c0_36, %c0_37, %c24] : memref<3x16x32xf32, #tpu.memory_space<vmem>>, vector<1x16x8xf32>
    %42 = vector.shape_cast %41 : vector<1x16x8xf32> to vector<16x8xf32>
    %43 = vector.shape_cast %36 : vector<16x8xf32> to vector<1x16x8xf32>
    %44 = vector.shape_cast %38 : vector<16x8xf32> to vector<1x16x8xf32>
    %45 = vector.shape_cast %40 : vector<16x8xf32> to vector<1x16x8xf32>
    %46 = vector.shape_cast %42 : vector<16x8xf32> to vector<1x16x8xf32>
    %47 = tpu.concatenate %43, %44, %45, %46 in 0 : vector<1x16x8xf32>, vector<1x16x8xf32>, vector<1x16x8xf32>, vector<1x16x8xf32> -> vector<4x16x8xf32>
    %c1_38 = arith.constant 1 : index
    %c0_39 = arith.constant 0 : index
    %c0_40 = arith.constant 0 : index
    %48 = vector.load %arg14[%c1_38, %c0_39, %c0_40] : memref<3x16x32xf32, #tpu.memory_space<vmem>>, vector<1x16x8xf32>
    %49 = vector.shape_cast %48 : vector<1x16x8xf32> to vector<16x8xf32>
    %c1_41 = arith.constant 1 : index
    %c0_42 = arith.constant 0 : index
    %c8_43 = arith.constant 8 : index
    %50 = vector.load %arg14[%c1_41, %c0_42, %c8_43] : memref<3x16x32xf32, #tpu.memory_space<vmem>>, vector<1x16x8xf32>
    %51 = vector.shape_cast %50 : vector<1x16x8xf32> to vector<16x8xf32>
    %c1_44 = arith.constant 1 : index
    %c0_45 = arith.constant 0 : index
    %c16_46 = arith.constant 16 : index
    %52 = vector.load %arg14[%c1_44, %c0_45, %c16_46] : memref<3x16x32xf32, #tpu.memory_space<vmem>>, vector<1x16x8xf32>
    %53 = vector.shape_cast %52 : vector<1x16x8xf32> to vector<16x8xf32>
    %c1_47 = arith.constant 1 : index
    %c0_48 = arith.constant 0 : index
    %c24_49 = arith.constant 24 : index
    %54 = vector.load %arg14[%c1_47, %c0_48, %c24_49] : memref<3x16x32xf32, #tpu.memory_space<vmem>>, vector<1x16x8xf32>
    %55 = vector.shape_cast %54 : vector<1x16x8xf32> to vector<16x8xf32>
    %56 = vector.shape_cast %49 : vector<16x8xf32> to vector<1x16x8xf32>
    %57 = vector.shape_cast %51 : vector<16x8xf32> to vector<1x16x8xf32>
    %58 = vector.shape_cast %53 : vector<16x8xf32> to vector<1x16x8xf32>
    %59 = vector.shape_cast %55 : vector<16x8xf32> to vector<1x16x8xf32>
    %60 = tpu.concatenate %56, %57, %58, %59 in 0 : vector<1x16x8xf32>, vector<1x16x8xf32>, vector<1x16x8xf32>, vector<1x16x8xf32> -> vector<4x16x8xf32>
    %c2_50 = arith.constant 2 : index
    %c0_51 = arith.constant 0 : index
    %c0_52 = arith.constant 0 : index
    %61 = vector.load %arg14[%c2_50, %c0_51, %c0_52] : memref<3x16x32xf32, #tpu.memory_space<vmem>>, vector<1x16x8xf32>
    %62 = vector.shape_cast %61 : vector<1x16x8xf32> to vector<16x8xf32>
    %c2_53 = arith.constant 2 : index
    %c0_54 = arith.constant 0 : index
    %c8_55 = arith.constant 8 : index
    %63 = vector.load %arg14[%c2_53, %c0_54, %c8_55] : memref<3x16x32xf32, #tpu.memory_space<vmem>>, vector<1x16x8xf32>
    %64 = vector.shape_cast %63 : vector<1x16x8xf32> to vector<16x8xf32>
    %c2_56 = arith.constant 2 : index
    %c0_57 = arith.constant 0 : index
    %c16_58 = arith.constant 16 : index
    %65 = vector.load %arg14[%c2_56, %c0_57, %c16_58] : memref<3x16x32xf32, #tpu.memory_space<vmem>>, vector<1x16x8xf32>
    %66 = vector.shape_cast %65 : vector<1x16x8xf32> to vector<16x8xf32>
    %c2_59 = arith.constant 2 : index
    %c0_60 = arith.constant 0 : index
    %c24_61 = arith.constant 24 : index
    %67 = vector.load %arg14[%c2_59, %c0_60, %c24_61] : memref<3x16x32xf32, #tpu.memory_space<vmem>>, vector<1x16x8xf32>
    %68 = vector.shape_cast %67 : vector<1x16x8xf32> to vector<16x8xf32>
    %69 = vector.shape_cast %62 : vector<16x8xf32> to vector<1x16x8xf32>
    %70 = vector.shape_cast %64 : vector<16x8xf32> to vector<1x16x8xf32>
    %71 = vector.shape_cast %66 : vector<16x8xf32> to vector<1x16x8xf32>
    %72 = vector.shape_cast %68 : vector<16x8xf32> to vector<1x16x8xf32>
    %73 = tpu.concatenate %69, %70, %71, %72 in 0 : vector<1x16x8xf32>, vector<1x16x8xf32>, vector<1x16x8xf32>, vector<1x16x8xf32> -> vector<4x16x8xf32>
    "tpu.trace_start"() <{level = 10 : i32, message = "hqd,hkd->hqk"}> : () -> ()
    %cst_62 = arith.constant dense<0.000000e+00> : vector<4x16x16xf32>
    %74 = tpu.matmul %47, %60, %cst_62 {dimension_numbers = #tpu.dot_dimension_numbers<[2], [2], [1], [1], [0, 0, 0, 1, 1, 1], [0], [0]>} : vector<4x16x8xf32>, vector<4x16x8xf32>, vector<4x16x16xf32> -> vector<4x16x16xf32>
    "tpu.trace_stop"() : () -> ()
    %cst_63 = arith.constant 0.353553385 : f32
    %75 = vector.broadcast %cst_63 : f32 to vector<4x16x16xf32>
    %76 = arith.mulf %74, %75 : vector<4x16x16xf32>
    %77 = vector.shape_cast %5 : vector<16x16xf32> to vector<1x16x16xf32>
    %78 = vector.broadcast %77 : vector<1x16x16xf32> to vector<4x16x16xf32>
    %79 = arith.addf %76, %78 : vector<4x16x16xf32>
    %cst_64 = arith.constant dense<0xFF800000> : vector<4x16xf32>
    %80 = vector.multi_reduction <maximumf>, %79, %cst_64 [2] : vector<4x16x16xf32> to vector<4x16xf32>
    %81 = vector.shape_cast %80 : vector<4x16xf32> to vector<4x16x1xf32>
    %82 = vector.broadcast %81 : vector<4x16x1xf32> to vector<4x16x16xf32>
    %83 = arith.subf %79, %82 : vector<4x16x16xf32>
    %84 = math.exp %83 : vector<4x16x16xf32>
    %cst_65 = arith.constant dense<0.000000e+00> : vector<4x16xf32>
    %85 = vector.multi_reduction <add>, %84, %cst_65 [2] : vector<4x16x16xf32> to vector<4x16xf32>
    %86 = vector.shape_cast %85 : vector<4x16xf32> to vector<4x16x1xf32>
    %87 = tpu.reciprocal %86 {approx = true} : vector<4x16x1xf32> -> vector<4x16x1xf32>
    %88 = vector.broadcast %87 : vector<4x16x1xf32> to vector<4x16x16xf32>
    %89 = arith.mulf %84, %88 : vector<4x16x16xf32>
    "tpu.trace_start"() <{level = 10 : i32, message = "hqk,hkd->hqd"}> : () -> ()
    %cst_66 = arith.constant dense<0.000000e+00> : vector<4x16x8xf32>
    %90 = tpu.matmul %89, %73, %cst_66 {dimension_numbers = #tpu.dot_dimension_numbers<[2], [1], [1], [2], [0, 0, 0, 1, 1, 2], [0], [0]>} : vector<4x16x16xf32>, vector<4x16x8xf32>, vector<4x16x8xf32> -> vector<4x16x8xf32>
    "tpu.trace_stop"() : () -> ()
    %91 = vector.extract_strided_slice %90 {offsets = [0, 0, 0], sizes = [1, 16, 8], strides = [1, 1, 1]} : vector<4x16x8xf32> to vector<1x16x8xf32>
    %92 = vector.shape_cast %91 : vector<1x16x8xf32> to vector<16x8xf32>
    %c0_67 = arith.constant 0 : index
    %c0_68 = arith.constant 0 : index
    %c0_69 = arith.constant 0 : index
    %93 = vector.load %arg14[%c0_67, %c0_68, %c0_69] : memref<3x16x32xf32, #tpu.memory_space<vmem>>, vector<1x16x8xf32>
    %94 = vector.shape_cast %93 : vector<1x16x8xf32> to vector<16x8xf32>
    %95 = vector.shape_cast %92 : vector<16x8xf32> to vector<1x16x8xf32>
    tpu.vector_store %arg14[%c0_67, %c0_68, %c0_69], %95 {strides = array<i32>} : memref<3x16x32xf32, #tpu.memory_space<vmem>>, vector<1x16x8xf32>,
    %96 = vector.extract_strided_slice %90 {offsets = [1, 0, 0], sizes = [1, 16, 8], strides = [1, 1, 1]} : vector<4x16x8xf32> to vector<1x16x8xf32>
    %97 = vector.shape_cast %96 : vector<1x16x8xf32> to vector<16x8xf32>
    %c0_70 = arith.constant 0 : index
    %c0_71 = arith.constant 0 : index
    %c8_72 = arith.constant 8 : index
    %98 = vector.load %arg14[%c0_70, %c0_71, %c8_72] : memref<3x16x32xf32, #tpu.memory_space<vmem>>, vector<1x16x8xf32>
    %99 = vector.shape_cast %98 : vector<1x16x8xf32> to vector<16x8xf32>
    %100 = vector.shape_cast %97 : vector<16x8xf32> to vector<1x16x8xf32>
    tpu.vector_store %arg14[%c0_70, %c0_71, %c8_72], %100 {strides = array<i32>} : memref<3x16x32xf32, #tpu.memory_space<vmem>>, vector<1x16x8xf32>,
    %101 = vector.extract_strided_slice %90 {offsets = [2, 0, 0], sizes = [1, 16, 8], strides = [1, 1, 1]} : vector<4x16x8xf32> to vector<1x16x8xf32>
    %102 = vector.shape_cast %101 : vector<1x16x8xf32> to vector<16x8xf32>
    %c0_73 = arith.constant 0 : index
    %c0_74 = arith.constant 0 : index
    %c16_75 = arith.constant 16 : index
    %103 = vector.load %arg14[%c0_73, %c0_74, %c16_75] : memref<3x16x32xf32, #tpu.memory_space<vmem>>, vector<1x16x8xf32>
    %104 = vector.shape_cast %103 : vector<1x16x8xf32> to vector<16x8xf32>
    %105 = vector.shape_cast %102 : vector<16x8xf32> to vector<1x16x8xf32>
    tpu.vector_store %arg14[%c0_73, %c0_74, %c16_75], %105 {strides = array<i32>} : memref<3x16x32xf32, #tpu.memory_space<vmem>>, vector<1x16x8xf32>,
    %106 = vector.extract_strided_slice %90 {offsets = [3, 0, 0], sizes = [1, 16, 8], strides = [1, 1, 1]} : vector<4x16x8xf32> to vector<1x16x8xf32>
    %107 = vector.shape_cast %106 : vector<1x16x8xf32> to vector<16x8xf32>
    %c0_76 = arith.constant 0 : index
    %c0_77 = arith.constant 0 : index
    %c24_78 = arith.constant 24 : index
    %108 = vector.load %arg14[%c0_76, %c0_77, %c24_78] : memref<3x16x32xf32, #tpu.memory_space<vmem>>, vector<1x16x8xf32>
    %109 = vector.shape_cast %108 : vector<1x16x8xf32> to vector<16x8xf32>
    %110 = vector.shape_cast %107 : vector<16x8xf32> to vector<1x16x8xf32>
    tpu.vector_store %arg14[%c0_76, %c0_77, %c24_78], %110 {strides = array<i32>} : memref<3x16x32xf32, #tpu.memory_space<vmem>>, vector<1x16x8xf32>,
    %c0_79 = arith.constant 0 : index
    %c0_80 = arith.constant 0 : index
    %c0_81 = arith.constant 0 : index
    %111 = vector.load %arg14[%c0_79, %c0_80, %c0_81] : memref<3x16x32xf32, #tpu.memory_space<vmem>>, vector<1x16x32xf32>
    %112 = vector.shape_cast %111 : vector<1x16x32xf32> to vector<16x32xf32>
    %c0_82 = arith.constant 0 : index
    %c0_83 = arith.constant 0 : index
    %c0_84 = arith.constant 0 : index
    %113 = vector.load %arg6[%c0_82, %c0_83, %c0_84] : memref<2x32x32xf32, #tpu.memory_space<vmem>>, vector<1x32x32xf32>
    %114 = vector.shape_cast %113 : vector<1x32x32xf32> to vector<32x32xf32>
    %cst_85 = arith.constant dense<0.000000e+00> : vector<16x32xf32>
    %115 = tpu.matmul %112, %114, %cst_85 {dimension_numbers = #tpu.dot_dimension_numbers<[1], [0], [0], [1], [0, 0, 1, 1], [], []>} : vector<16x32xf32>, vector<32x32xf32>, vector<16x32xf32> -> vector<16x32xf32>
    %116 = vector.extract_strided_slice %7 {offsets = [3, 0], sizes = [1, 32], strides = [1, 1]} : vector<9x32xf32> to vector<1x32xf32>
    %117 = vector.broadcast %116 : vector<1x32xf32> to vector<16x32xf32>
    %118 = arith.addf %115, %117 : vector<16x32xf32>
    %119 = arith.addf %4, %118 : vector<16x32xf32>
    %120 = vector.extract_strided_slice %7 {offsets = [4, 0], sizes = [1, 32], strides = [1, 1]} : vector<9x32xf32> to vector<1x32xf32>
    %121 = vector.extract_strided_slice %7 {offsets = [5, 0], sizes = [1, 32], strides = [1, 1]} : vector<9x32xf32> to vector<1x32xf32>
    %cst_86 = arith.constant dense<0.000000e+00> : vector<16xf32>
    %122 = vector.multi_reduction <add>, %119, %cst_86 [1] : vector<16x32xf32> to vector<16xf32>
    %123 = vector.shape_cast %122 : vector<16xf32> to vector<16x1xf32>
    %cst_87 = arith.constant 3.200000e+01 : f32
    %124 = vector.broadcast %cst_87 : f32 to vector<16x1xf32>
    %125 = arith.divf %123, %124 : vector<16x1xf32>
    %126 = vector.broadcast %125 : vector<16x1xf32> to vector<16x32xf32>
    %127 = arith.subf %119, %126 : vector<16x32xf32>
    %128 = arith.mulf %127, %127 : vector<16x32xf32>
    %cst_88 = arith.constant dense<0.000000e+00> : vector<16xf32>
    %129 = vector.multi_reduction <add>, %128, %cst_88 [1] : vector<16x32xf32> to vector<16xf32>
    %130 = vector.shape_cast %129 : vector<16xf32> to vector<16x1xf32>
    %cst_89 = arith.constant 3.200000e+01 : f32
    %131 = vector.broadcast %cst_89 : f32 to vector<16x1xf32>
    %132 = arith.divf %130, %131 : vector<16x1xf32>
    %cst_90 = arith.constant 9.99999974E-6 : f32
    %133 = vector.broadcast %cst_90 : f32 to vector<16x1xf32>
    %134 = arith.addf %132, %133 : vector<16x1xf32>
    %135 = math.rsqrt %134 : vector<16x1xf32>
    %136 = vector.broadcast %135 : vector<16x1xf32> to vector<16x32xf32>
    %137 = arith.mulf %127, %136 : vector<16x32xf32>
    %138 = vector.broadcast %120 : vector<1x32xf32> to vector<16x32xf32>
    %139 = arith.mulf %137, %138 : vector<16x32xf32>
    %140 = vector.broadcast %121 : vector<1x32xf32> to vector<16x32xf32>
    %141 = arith.addf %139, %140 : vector<16x32xf32>
    %c0_91 = arith.constant 0 : index
    %c0_92 = arith.constant 0 : index
    %c0_93 = arith.constant 0 : index
    %142 = vector.load %arg8[%c0_91, %c0_92, %c0_93] : memref<2x32x128xf32, #tpu.memory_space<vmem>>, vector<1x32x128xf32>
    %143 = vector.shape_cast %142 : vector<1x32x128xf32> to vector<32x128xf32>
    %cst_94 = arith.constant dense<0.000000e+00> : vector<16x128xf32>
    %144 = tpu.matmul %141, %143, %cst_94 {dimension_numbers = #tpu.dot_dimension_numbers<[1], [0], [0], [1], [0, 0, 1, 1], [], []>} : vector<16x32xf32>, vector<32x128xf32>, vector<16x128xf32> -> vector<16x128xf32>
    %c0_95 = arith.constant 0 : index
    %c0_96 = arith.constant 0 : index
    %145 = vector.load %arg9[%c0_95, %c0_96] : memref<2x128xf32, #tpu.memory_space<vmem>>, vector<1x128xf32>
    %146 = vector.broadcast %145 : vector<1x128xf32> to vector<16x128xf32>
    %147 = arith.addf %144, %146 : vector<16x128xf32>
    %cst_97 = arith.constant 0.000000e+00 : f32
    %148 = vector.broadcast %cst_97 : f32 to vector<16x128xf32>
    %149 = arith.maximumf %147, %148 : vector<16x128xf32>
    %c0_98 = arith.constant 0 : index
    %c0_99 = arith.constant 0 : index
    %c0_100 = arith.constant 0 : index
    %150 = vector.load %arg10[%c0_98, %c0_99, %c0_100] : memref<2x128x32xf32, #tpu.memory_space<vmem>>, vector<1x128x32xf32>
    %151 = vector.shape_cast %150 : vector<1x128x32xf32> to vector<128x32xf32>
    %cst_101 = arith.constant dense<0.000000e+00> : vector<16x32xf32>
    %152 = tpu.matmul %149, %151, %cst_101 {dimension_numbers = #tpu.dot_dimension_numbers<[1], [0], [0], [1], [0, 0, 1, 1], [], []>} : vector<16x128xf32>, vector<128x32xf32>, vector<16x32xf32> -> vector<16x32xf32>
    %153 = vector.extract_strided_slice %7 {offsets = [8, 0], sizes = [1, 32], strides = [1, 1]} : vector<9x32xf32> to vector<1x32xf32>
    %154 = vector.broadcast %153 : vector<1x32xf32> to vector<16x32xf32>
    %155 = arith.addf %152, %154 : vector<16x32xf32>
    %156 = arith.addf %141, %155 : vector<16x32xf32>
    %157 = vector.extract_strided_slice %7 {offsets = [6, 0], sizes = [1, 32], strides = [1, 1]} : vector<9x32xf32> to vector<1x32xf32>
    %158 = vector.extract_strided_slice %7 {offsets = [7, 0], sizes = [1, 32], strides = [1, 1]} : vector<9x32xf32> to vector<1x32xf32>
    %cst_102 = arith.constant dense<0.000000e+00> : vector<16xf32>
    %159 = vector.multi_reduction <add>, %156, %cst_102 [1] : vector<16x32xf32> to vector<16xf32>
    %160 = vector.shape_cast %159 : vector<16xf32> to vector<16x1xf32>
    %cst_103 = arith.constant 3.200000e+01 : f32
    %161 = vector.broadcast %cst_103 : f32 to vector<16x1xf32>
    %162 = arith.divf %160, %161 : vector<16x1xf32>
    %163 = vector.broadcast %162 : vector<16x1xf32> to vector<16x32xf32>
    %164 = arith.subf %156, %163 : vector<16x32xf32>
    %165 = arith.mulf %164, %164 : vector<16x32xf32>
    %cst_104 = arith.constant dense<0.000000e+00> : vector<16xf32>
    %166 = vector.multi_reduction <add>, %165, %cst_104 [1] : vector<16x32xf32> to vector<16xf32>
    %167 = vector.shape_cast %166 : vector<16xf32> to vector<16x1xf32>
    %cst_105 = arith.constant 3.200000e+01 : f32
    %168 = vector.broadcast %cst_105 : f32 to vector<16x1xf32>
    %169 = arith.divf %167, %168 : vector<16x1xf32>
    %cst_106 = arith.constant 9.99999974E-6 : f32
    %170 = vector.broadcast %cst_106 : f32 to vector<16x1xf32>
    %171 = arith.addf %169, %170 : vector<16x1xf32>
    %172 = math.rsqrt %171 : vector<16x1xf32>
    %173 = vector.broadcast %172 : vector<16x1xf32> to vector<16x32xf32>
    %174 = arith.mulf %164, %173 : vector<16x32xf32>
    %175 = vector.broadcast %157 : vector<1x32xf32> to vector<16x32xf32>
    %176 = arith.mulf %174, %175 : vector<16x32xf32>
    %177 = vector.broadcast %158 : vector<1x32xf32> to vector<16x32xf32>
    %178 = arith.addf %176, %177 : vector<16x32xf32>
    %c1_107 = arith.constant 1 : index
    %c0_108 = arith.constant 0 : index
    %c0_109 = arith.constant 0 : index
    %179 = vector.load %arg7[%c1_107, %c0_108, %c0_109] : memref<2x9x32xf32, #tpu.memory_space<vmem>>, vector<1x9x32xf32>
    %180 = vector.shape_cast %179 : vector<1x9x32xf32> to vector<9x32xf32>
    %c3 = arith.constant 3 : index
    %c0_110 = arith.constant 0 : index
    %c0_111 = arith.constant 0 : index
    %181 = vector.load %arg5[%c3, %c0_110, %c0_111] : memref<6x32x32xf32, #tpu.memory_space<vmem>>, vector<1x32x32xf32>
    %182 = vector.shape_cast %181 : vector<1x32x32xf32> to vector<32x32xf32>
    %cst_112 = arith.constant dense<0.000000e+00> : vector<16x32xf32>
    %183 = tpu.matmul %178, %182, %cst_112 {dimension_numbers = #tpu.dot_dimension_numbers<[1], [0], [0], [1], [0, 0, 1, 1], [], []>} : vector<16x32xf32>, vector<32x32xf32>, vector<16x32xf32> -> vector<16x32xf32>
    %184 = vector.extract_strided_slice %180 {offsets = [0, 0], sizes = [1, 32], strides = [1, 1]} : vector<9x32xf32> to vector<1x32xf32>
    %185 = vector.broadcast %184 : vector<1x32xf32> to vector<16x32xf32>
    %186 = arith.addf %183, %185 : vector<16x32xf32>
    %c4 = arith.constant 4 : index
    %c0_113 = arith.constant 0 : index
    %c0_114 = arith.constant 0 : index
    %187 = vector.load %arg5[%c4, %c0_113, %c0_114] : memref<6x32x32xf32, #tpu.memory_space<vmem>>, vector<1x32x32xf32>
    %188 = vector.shape_cast %187 : vector<1x32x32xf32> to vector<32x32xf32>
    %cst_115 = arith.constant dense<0.000000e+00> : vector<16x32xf32>
    %189 = tpu.matmul %178, %188, %cst_115 {dimension_numbers = #tpu.dot_dimension_numbers<[1], [0], [0], [1], [0, 0, 1, 1], [], []>} : vector<16x32xf32>, vector<32x32xf32>, vector<16x32xf32> -> vector<16x32xf32>
    %190 = vector.extract_strided_slice %180 {offsets = [1, 0], sizes = [1, 32], strides = [1, 1]} : vector<9x32xf32> to vector<1x32xf32>
    %191 = vector.broadcast %190 : vector<1x32xf32> to vector<16x32xf32>
    %192 = arith.addf %189, %191 : vector<16x32xf32>
    %c5 = arith.constant 5 : index
    %c0_116 = arith.constant 0 : index
    %c0_117 = arith.constant 0 : index
    %193 = vector.load %arg5[%c5, %c0_116, %c0_117] : memref<6x32x32xf32, #tpu.memory_space<vmem>>, vector<1x32x32xf32>
    %194 = vector.shape_cast %193 : vector<1x32x32xf32> to vector<32x32xf32>
    %cst_118 = arith.constant dense<0.000000e+00> : vector<16x32xf32>
    %195 = tpu.matmul %178, %194, %cst_118 {dimension_numbers = #tpu.dot_dimension_numbers<[1], [0], [0], [1], [0, 0, 1, 1], [], []>} : vector<16x32xf32>, vector<32x32xf32>, vector<16x32xf32> -> vector<16x32xf32>
    %196 = vector.extract_strided_slice %180 {offsets = [2, 0], sizes = [1, 32], strides = [1, 1]} : vector<9x32xf32> to vector<1x32xf32>
    %197 = vector.broadcast %196 : vector<1x32xf32> to vector<16x32xf32>
    %198 = arith.addf %195, %197 : vector<16x32xf32>
    %c0_119 = arith.constant 0 : index
    %c0_120 = arith.constant 0 : index
    %c0_121 = arith.constant 0 : index
    %199 = vector.load %arg14[%c0_119, %c0_120, %c0_121] : memref<3x16x32xf32, #tpu.memory_space<vmem>>, vector<1x16x32xf32>
    %200 = vector.shape_cast %199 : vector<1x16x32xf32> to vector<16x32xf32>
    %201 = vector.shape_cast %186 : vector<16x32xf32> to vector<1x16x32xf32>
    tpu.vector_store %arg14[%c0_119, %c0_120, %c0_121], %201 {strides = array<i32>} : memref<3x16x32xf32, #tpu.memory_space<vmem>>, vector<1x16x32xf32>,
    %c1_122 = arith.constant 1 : index
    %c0_123 = arith.constant 0 : index
    %c0_124 = arith.constant 0 : index
    %202 = vector.load %arg14[%c1_122, %c0_123, %c0_124] : memref<3x16x32xf32, #tpu.memory_space<vmem>>, vector<1x16x32xf32>
    %203 = vector.shape_cast %202 : vector<1x16x32xf32> to vector<16x32xf32>
    %204 = vector.shape_cast %192 : vector<16x32xf32> to vector<1x16x32xf32>
    tpu.vector_store %arg14[%c1_122, %c0_123, %c0_124], %204 {strides = array<i32>} : memref<3x16x32xf32, #tpu.memory_space<vmem>>, vector<1x16x32xf32>,
    %c2_125 = arith.constant 2 : index
    %c0_126 = arith.constant 0 : index
    %c0_127 = arith.constant 0 : index
    %205 = vector.load %arg14[%c2_125, %c0_126, %c0_127] : memref<3x16x32xf32, #tpu.memory_space<vmem>>, vector<1x16x32xf32>
    %206 = vector.shape_cast %205 : vector<1x16x32xf32> to vector<16x32xf32>
    %207 = vector.shape_cast %198 : vector<16x32xf32> to vector<1x16x32xf32>
    tpu.vector_store %arg14[%c2_125, %c0_126, %c0_127], %207 {strides = array<i32>} : memref<3x16x32xf32, #tpu.memory_space<vmem>>, vector<1x16x32xf32>,
    %c0_128 = arith.constant 0 : index
    %c0_129 = arith.constant 0 : index
    %c0_130 = arith.constant 0 : index
    %208 = vector.load %arg14[%c0_128, %c0_129, %c0_130] : memref<3x16x32xf32, #tpu.memory_space<vmem>>, vector<1x16x8xf32>
    %209 = vector.shape_cast %208 : vector<1x16x8xf32> to vector<16x8xf32>
    %c0_131 = arith.constant 0 : index
    %c0_132 = arith.constant 0 : index
    %c8_133 = arith.constant 8 : index
    %210 = vector.load %arg14[%c0_131, %c0_132, %c8_133] : memref<3x16x32xf32, #tpu.memory_space<vmem>>, vector<1x16x8xf32>
    %211 = vector.shape_cast %210 : vector<1x16x8xf32> to vector<16x8xf32>
    %c0_134 = arith.constant 0 : index
    %c0_135 = arith.constant 0 : index
    %c16_136 = arith.constant 16 : index
    %212 = vector.load %arg14[%c0_134, %c0_135, %c16_136] : memref<3x16x32xf32, #tpu.memory_space<vmem>>, vector<1x16x8xf32>
    %213 = vector.shape_cast %212 : vector<1x16x8xf32> to vector<16x8xf32>
    %c0_137 = arith.constant 0 : index
    %c0_138 = arith.constant 0 : index
    %c24_139 = arith.constant 24 : index
    %214 = vector.load %arg14[%c0_137, %c0_138, %c24_139] : memref<3x16x32xf32, #tpu.memory_space<vmem>>, vector<1x16x8xf32>
    %215 = vector.shape_cast %214 : vector<1x16x8xf32> to vector<16x8xf32>
    %216 = vector.shape_cast %209 : vector<16x8xf32> to vector<1x16x8xf32>
    %217 = vector.shape_cast %211 : vector<16x8xf32> to vector<1x16x8xf32>
    %218 = vector.shape_cast %213 : vector<16x8xf32> to vector<1x16x8xf32>
    %219 = vector.shape_cast %215 : vector<16x8xf32> to vector<1x16x8xf32>
    %220 = tpu.concatenate %216, %217, %218, %219 in 0 : vector<1x16x8xf32>, vector<1x16x8xf32>, vector<1x16x8xf32>, vector<1x16x8xf32> -> vector<4x16x8xf32>
    %c1_140 = arith.constant 1 : index
    %c0_141 = arith.constant 0 : index
    %c0_142 = arith.constant 0 : index
    %221 = vector.load %arg14[%c1_140, %c0_141, %c0_142] : memref<3x16x32xf32, #tpu.memory_space<vmem>>, vector<1x16x8xf32>
    %222 = vector.shape_cast %221 : vector<1x16x8xf32> to vector<16x8xf32>
    %c1_143 = arith.constant 1 : index
    %c0_144 = arith.constant 0 : index
    %c8_145 = arith.constant 8 : index
    %223 = vector.load %arg14[%c1_143, %c0_144, %c8_145] : memref<3x16x32xf32, #tpu.memory_space<vmem>>, vector<1x16x8xf32>
    %224 = vector.shape_cast %223 : vector<1x16x8xf32> to vector<16x8xf32>
    %c1_146 = arith.constant 1 : index
    %c0_147 = arith.constant 0 : index
    %c16_148 = arith.constant 16 : index
    %225 = vector.load %arg14[%c1_146, %c0_147, %c16_148] : memref<3x16x32xf32, #tpu.memory_space<vmem>>, vector<1x16x8xf32>
    %226 = vector.shape_cast %225 : vector<1x16x8xf32> to vector<16x8xf32>
    %c1_149 = arith.constant 1 : index
    %c0_150 = arith.constant 0 : index
    %c24_151 = arith.constant 24 : index
    %227 = vector.load %arg14[%c1_149, %c0_150, %c24_151] : memref<3x16x32xf32, #tpu.memory_space<vmem>>, vector<1x16x8xf32>
    %228 = vector.shape_cast %227 : vector<1x16x8xf32> to vector<16x8xf32>
    %229 = vector.shape_cast %222 : vector<16x8xf32> to vector<1x16x8xf32>
    %230 = vector.shape_cast %224 : vector<16x8xf32> to vector<1x16x8xf32>
    %231 = vector.shape_cast %226 : vector<16x8xf32> to vector<1x16x8xf32>
    %232 = vector.shape_cast %228 : vector<16x8xf32> to vector<1x16x8xf32>
    %233 = tpu.concatenate %229, %230, %231, %232 in 0 : vector<1x16x8xf32>, vector<1x16x8xf32>, vector<1x16x8xf32>, vector<1x16x8xf32> -> vector<4x16x8xf32>
    %c2_152 = arith.constant 2 : index
    %c0_153 = arith.constant 0 : index
    %c0_154 = arith.constant 0 : index
    %234 = vector.load %arg14[%c2_152, %c0_153, %c0_154] : memref<3x16x32xf32, #tpu.memory_space<vmem>>, vector<1x16x8xf32>
    %235 = vector.shape_cast %234 : vector<1x16x8xf32> to vector<16x8xf32>
    %c2_155 = arith.constant 2 : index
    %c0_156 = arith.constant 0 : index
    %c8_157 = arith.constant 8 : index
    %236 = vector.load %arg14[%c2_155, %c0_156, %c8_157] : memref<3x16x32xf32, #tpu.memory_space<vmem>>, vector<1x16x8xf32>
    %237 = vector.shape_cast %236 : vector<1x16x8xf32> to vector<16x8xf32>
    %c2_158 = arith.constant 2 : index
    %c0_159 = arith.constant 0 : index
    %c16_160 = arith.constant 16 : index
    %238 = vector.load %arg14[%c2_158, %c0_159, %c16_160] : memref<3x16x32xf32, #tpu.memory_space<vmem>>, vector<1x16x8xf32>
    %239 = vector.shape_cast %238 : vector<1x16x8xf32> to vector<16x8xf32>
    %c2_161 = arith.constant 2 : index
    %c0_162 = arith.constant 0 : index
    %c24_163 = arith.constant 24 : index
    %240 = vector.load %arg14[%c2_161, %c0_162, %c24_163] : memref<3x16x32xf32, #tpu.memory_space<vmem>>, vector<1x16x8xf32>
    %241 = vector.shape_cast %240 : vector<1x16x8xf32> to vector<16x8xf32>
    %242 = vector.shape_cast %235 : vector<16x8xf32> to vector<1x16x8xf32>
    %243 = vector.shape_cast %237 : vector<16x8xf32> to vector<1x16x8xf32>
    %244 = vector.shape_cast %239 : vector<16x8xf32> to vector<1x16x8xf32>
    %245 = vector.shape_cast %241 : vector<16x8xf32> to vector<1x16x8xf32>
    %246 = tpu.concatenate %242, %243, %244, %245 in 0 : vector<1x16x8xf32>, vector<1x16x8xf32>, vector<1x16x8xf32>, vector<1x16x8xf32> -> vector<4x16x8xf32>
    "tpu.trace_start"() <{level = 10 : i32, message = "hqd,hkd->hqk"}> : () -> ()
    %cst_164 = arith.constant dense<0.000000e+00> : vector<4x16x16xf32>
    %247 = tpu.matmul %220, %233, %cst_164 {dimension_numbers = #tpu.dot_dimension_numbers<[2], [2], [1], [1], [0, 0, 0, 1, 1, 1], [0], [0]>} : vector<4x16x8xf32>, vector<4x16x8xf32>, vector<4x16x16xf32> -> vector<4x16x16xf32>
    "tpu.trace_stop"() : () -> ()
    %cst_165 = arith.constant 0.353553385 : f32
    %248 = vector.broadcast %cst_165 : f32 to vector<4x16x16xf32>
    %249 = arith.mulf %247, %248 : vector<4x16x16xf32>
    %250 = vector.shape_cast %5 : vector<16x16xf32> to vector<1x16x16xf32>
    %251 = vector.broadcast %250 : vector<1x16x16xf32> to vector<4x16x16xf32>
    %252 = arith.addf %249, %251 : vector<4x16x16xf32>
    %cst_166 = arith.constant dense<0xFF800000> : vector<4x16xf32>
    %253 = vector.multi_reduction <maximumf>, %252, %cst_166 [2] : vector<4x16x16xf32> to vector<4x16xf32>
    %254 = vector.shape_cast %253 : vector<4x16xf32> to vector<4x16x1xf32>
    %255 = vector.broadcast %254 : vector<4x16x1xf32> to vector<4x16x16xf32>
    %256 = arith.subf %252, %255 : vector<4x16x16xf32>
    %257 = math.exp %256 : vector<4x16x16xf32>
    %cst_167 = arith.constant dense<0.000000e+00> : vector<4x16xf32>
    %258 = vector.multi_reduction <add>, %257, %cst_167 [2] : vector<4x16x16xf32> to vector<4x16xf32>
    %259 = vector.shape_cast %258 : vector<4x16xf32> to vector<4x16x1xf32>
    %260 = tpu.reciprocal %259 {approx = true} : vector<4x16x1xf32> -> vector<4x16x1xf32>
    %261 = vector.broadcast %260 : vector<4x16x1xf32> to vector<4x16x16xf32>
    %262 = arith.mulf %257, %261 : vector<4x16x16xf32>
    "tpu.trace_start"() <{level = 10 : i32, message = "hqk,hkd->hqd"}> : () -> ()
    %cst_168 = arith.constant dense<0.000000e+00> : vector<4x16x8xf32>
    %263 = tpu.matmul %262, %246, %cst_168 {dimension_numbers = #tpu.dot_dimension_numbers<[2], [1], [1], [2], [0, 0, 0, 1, 1, 2], [0], [0]>} : vector<4x16x16xf32>, vector<4x16x8xf32>, vector<4x16x8xf32> -> vector<4x16x8xf32>
    "tpu.trace_stop"() : () -> ()
    %264 = vector.extract_strided_slice %263 {offsets = [0, 0, 0], sizes = [1, 16, 8], strides = [1, 1, 1]} : vector<4x16x8xf32> to vector<1x16x8xf32>
    %265 = vector.shape_cast %264 : vector<1x16x8xf32> to vector<16x8xf32>
    %c0_169 = arith.constant 0 : index
    %c0_170 = arith.constant 0 : index
    %c0_171 = arith.constant 0 : index
    %266 = vector.load %arg14[%c0_169, %c0_170, %c0_171] : memref<3x16x32xf32, #tpu.memory_space<vmem>>, vector<1x16x8xf32>
    %267 = vector.shape_cast %266 : vector<1x16x8xf32> to vector<16x8xf32>
    %268 = vector.shape_cast %265 : vector<16x8xf32> to vector<1x16x8xf32>
    tpu.vector_store %arg14[%c0_169, %c0_170, %c0_171], %268 {strides = array<i32>} : memref<3x16x32xf32, #tpu.memory_space<vmem>>, vector<1x16x8xf32>,
    %269 = vector.extract_strided_slice %263 {offsets = [1, 0, 0], sizes = [1, 16, 8], strides = [1, 1, 1]} : vector<4x16x8xf32> to vector<1x16x8xf32>
    %270 = vector.shape_cast %269 : vector<1x16x8xf32> to vector<16x8xf32>
    %c0_172 = arith.constant 0 : index
    %c0_173 = arith.constant 0 : index
    %c8_174 = arith.constant 8 : index
    %271 = vector.load %arg14[%c0_172, %c0_173, %c8_174] : memref<3x16x32xf32, #tpu.memory_space<vmem>>, vector<1x16x8xf32>
    %272 = vector.shape_cast %271 : vector<1x16x8xf32> to vector<16x8xf32>
    %273 = vector.shape_cast %270 : vector<16x8xf32> to vector<1x16x8xf32>
    tpu.vector_store %arg14[%c0_172, %c0_173, %c8_174], %273 {strides = array<i32>} : memref<3x16x32xf32, #tpu.memory_space<vmem>>, vector<1x16x8xf32>,
    %274 = vector.extract_strided_slice %263 {offsets = [2, 0, 0], sizes = [1, 16, 8], strides = [1, 1, 1]} : vector<4x16x8xf32> to vector<1x16x8xf32>
    %275 = vector.shape_cast %274 : vector<1x16x8xf32> to vector<16x8xf32>
    %c0_175 = arith.constant 0 : index
    %c0_176 = arith.constant 0 : index
    %c16_177 = arith.constant 16 : index
    %276 = vector.load %arg14[%c0_175, %c0_176, %c16_177] : memref<3x16x32xf32, #tpu.memory_space<vmem>>, vector<1x16x8xf32>
    %277 = vector.shape_cast %276 : vector<1x16x8xf32> to vector<16x8xf32>
    %278 = vector.shape_cast %275 : vector<16x8xf32> to vector<1x16x8xf32>
    tpu.vector_store %arg14[%c0_175, %c0_176, %c16_177], %278 {strides = array<i32>} : memref<3x16x32xf32, #tpu.memory_space<vmem>>, vector<1x16x8xf32>,
    %279 = vector.extract_strided_slice %263 {offsets = [3, 0, 0], sizes = [1, 16, 8], strides = [1, 1, 1]} : vector<4x16x8xf32> to vector<1x16x8xf32>
    %280 = vector.shape_cast %279 : vector<1x16x8xf32> to vector<16x8xf32>
    %c0_178 = arith.constant 0 : index
    %c0_179 = arith.constant 0 : index
    %c24_180 = arith.constant 24 : index
    %281 = vector.load %arg14[%c0_178, %c0_179, %c24_180] : memref<3x16x32xf32, #tpu.memory_space<vmem>>, vector<1x16x8xf32>
    %282 = vector.shape_cast %281 : vector<1x16x8xf32> to vector<16x8xf32>
    %283 = vector.shape_cast %280 : vector<16x8xf32> to vector<1x16x8xf32>
    tpu.vector_store %arg14[%c0_178, %c0_179, %c24_180], %283 {strides = array<i32>} : memref<3x16x32xf32, #tpu.memory_space<vmem>>, vector<1x16x8xf32>,
    %c0_181 = arith.constant 0 : index
    %c0_182 = arith.constant 0 : index
    %c0_183 = arith.constant 0 : index
    %284 = vector.load %arg14[%c0_181, %c0_182, %c0_183] : memref<3x16x32xf32, #tpu.memory_space<vmem>>, vector<1x16x32xf32>
    %285 = vector.shape_cast %284 : vector<1x16x32xf32> to vector<16x32xf32>
    %c1_184 = arith.constant 1 : index
    %c0_185 = arith.constant 0 : index
    %c0_186 = arith.constant 0 : index
    %286 = vector.load %arg6[%c1_184, %c0_185, %c0_186] : memref<2x32x32xf32, #tpu.memory_space<vmem>>, vector<1x32x32xf32>
    %287 = vector.shape_cast %286 : vector<1x32x32xf32> to vector<32x32xf32>
    %cst_187 = arith.constant dense<0.000000e+00> : vector<16x32xf32>
    %288 = tpu.matmul %285, %287, %cst_187 {dimension_numbers = #tpu.dot_dimension_numbers<[1], [0], [0], [1], [0, 0, 1, 1], [], []>} : vector<16x32xf32>, vector<32x32xf32>, vector<16x32xf32> -> vector<16x32xf32>
    %289 = vector.extract_strided_slice %180 {offsets = [3, 0], sizes = [1, 32], strides = [1, 1]} : vector<9x32xf32> to vector<1x32xf32>
    %290 = vector.broadcast %289 : vector<1x32xf32> to vector<16x32xf32>
    %291 = arith.addf %288, %290 : vector<16x32xf32>
    %292 = arith.addf %178, %291 : vector<16x32xf32>
    %293 = vector.extract_strided_slice %180 {offsets = [4, 0], sizes = [1, 32], strides = [1, 1]} : vector<9x32xf32> to vector<1x32xf32>
    %294 = vector.extract_strided_slice %180 {offsets = [5, 0], sizes = [1, 32], strides = [1, 1]} : vector<9x32xf32> to vector<1x32xf32>
    %cst_188 = arith.constant dense<0.000000e+00> : vector<16xf32>
    %295 = vector.multi_reduction <add>, %292, %cst_188 [1] : vector<16x32xf32> to vector<16xf32>
    %296 = vector.shape_cast %295 : vector<16xf32> to vector<16x1xf32>
    %cst_189 = arith.constant 3.200000e+01 : f32
    %297 = vector.broadcast %cst_189 : f32 to vector<16x1xf32>
    %298 = arith.divf %296, %297 : vector<16x1xf32>
    %299 = vector.broadcast %298 : vector<16x1xf32> to vector<16x32xf32>
    %300 = arith.subf %292, %299 : vector<16x32xf32>
    %301 = arith.mulf %300, %300 : vector<16x32xf32>
    %cst_190 = arith.constant dense<0.000000e+00> : vector<16xf32>
    %302 = vector.multi_reduction <add>, %301, %cst_190 [1] : vector<16x32xf32> to vector<16xf32>
    %303 = vector.shape_cast %302 : vector<16xf32> to vector<16x1xf32>
    %cst_191 = arith.constant 3.200000e+01 : f32
    %304 = vector.broadcast %cst_191 : f32 to vector<16x1xf32>
    %305 = arith.divf %303, %304 : vector<16x1xf32>
    %cst_192 = arith.constant 9.99999974E-6 : f32
    %306 = vector.broadcast %cst_192 : f32 to vector<16x1xf32>
    %307 = arith.addf %305, %306 : vector<16x1xf32>
    %308 = math.rsqrt %307 : vector<16x1xf32>
    %309 = vector.broadcast %308 : vector<16x1xf32> to vector<16x32xf32>
    %310 = arith.mulf %300, %309 : vector<16x32xf32>
    %311 = vector.broadcast %293 : vector<1x32xf32> to vector<16x32xf32>
    %312 = arith.mulf %310, %311 : vector<16x32xf32>
    %313 = vector.broadcast %294 : vector<1x32xf32> to vector<16x32xf32>
    %314 = arith.addf %312, %313 : vector<16x32xf32>
    %c1_193 = arith.constant 1 : index
    %c0_194 = arith.constant 0 : index
    %c0_195 = arith.constant 0 : index
    %315 = vector.load %arg8[%c1_193, %c0_194, %c0_195] : memref<2x32x128xf32, #tpu.memory_space<vmem>>, vector<1x32x128xf32>
    %316 = vector.shape_cast %315 : vector<1x32x128xf32> to vector<32x128xf32>
    %cst_196 = arith.constant dense<0.000000e+00> : vector<16x128xf32>
    %317 = tpu.matmul %314, %316, %cst_196 {dimension_numbers = #tpu.dot_dimension_numbers<[1], [0], [0], [1], [0, 0, 1, 1], [], []>} : vector<16x32xf32>, vector<32x128xf32>, vector<16x128xf32> -> vector<16x128xf32>
    %c1_197 = arith.constant 1 : index
    %c0_198 = arith.constant 0 : index
    %318 = vector.load %arg9[%c1_197, %c0_198] : memref<2x128xf32, #tpu.memory_space<vmem>>, vector<1x128xf32>
    %319 = vector.broadcast %318 : vector<1x128xf32> to vector<16x128xf32>
    %320 = arith.addf %317, %319 : vector<16x128xf32>
    %cst_199 = arith.constant 0.000000e+00 : f32
    %321 = vector.broadcast %cst_199 : f32 to vector<16x128xf32>
    %322 = arith.maximumf %320, %321 : vector<16x128xf32>
    %c1_200 = arith.constant 1 : index
    %c0_201 = arith.constant 0 : index
    %c0_202 = arith.constant 0 : index
    %323 = vector.load %arg10[%c1_200, %c0_201, %c0_202] : memref<2x128x32xf32, #tpu.memory_space<vmem>>, vector<1x128x32xf32>
    %324 = vector.shape_cast %323 : vector<1x128x32xf32> to vector<128x32xf32>
    %cst_203 = arith.constant dense<0.000000e+00> : vector<16x32xf32>
    %325 = tpu.matmul %322, %324, %cst_203 {dimension_numbers = #tpu.dot_dimension_numbers<[1], [0], [0], [1], [0, 0, 1, 1], [], []>} : vector<16x128xf32>, vector<128x32xf32>, vector<16x32xf32> -> vector<16x32xf32>
    %326 = vector.extract_strided_slice %180 {offsets = [8, 0], sizes = [1, 32], strides = [1, 1]} : vector<9x32xf32> to vector<1x32xf32>
    %327 = vector.broadcast %326 : vector<1x32xf32> to vector<16x32xf32>
    %328 = arith.addf %325, %327 : vector<16x32xf32>
    %329 = arith.addf %314, %328 : vector<16x32xf32>
    %330 = vector.extract_strided_slice %180 {offsets = [6, 0], sizes = [1, 32], strides = [1, 1]} : vector<9x32xf32> to vector<1x32xf32>
    %331 = vector.extract_strided_slice %180 {offsets = [7, 0], sizes = [1, 32], strides = [1, 1]} : vector<9x32xf32> to vector<1x32xf32>
    %cst_204 = arith.constant dense<0.000000e+00> : vector<16xf32>
    %332 = vector.multi_reduction <add>, %329, %cst_204 [1] : vector<16x32xf32> to vector<16xf32>
    %333 = vector.shape_cast %332 : vector<16xf32> to vector<16x1xf32>
    %cst_205 = arith.constant 3.200000e+01 : f32
    %334 = vector.broadcast %cst_205 : f32 to vector<16x1xf32>
    %335 = arith.divf %333, %334 : vector<16x1xf32>
    %336 = vector.broadcast %335 : vector<16x1xf32> to vector<16x32xf32>
    %337 = arith.subf %329, %336 : vector<16x32xf32>
    %338 = arith.mulf %337, %337 : vector<16x32xf32>
    %cst_206 = arith.constant dense<0.000000e+00> : vector<16xf32>
    %339 = vector.multi_reduction <add>, %338, %cst_206 [1] : vector<16x32xf32> to vector<16xf32>
    %340 = vector.shape_cast %339 : vector<16xf32> to vector<16x1xf32>
    %cst_207 = arith.constant 3.200000e+01 : f32
    %341 = vector.broadcast %cst_207 : f32 to vector<16x1xf32>
    %342 = arith.divf %340, %341 : vector<16x1xf32>
    %cst_208 = arith.constant 9.99999974E-6 : f32
    %343 = vector.broadcast %cst_208 : f32 to vector<16x1xf32>
    %344 = arith.addf %342, %343 : vector<16x1xf32>
    %345 = math.rsqrt %344 : vector<16x1xf32>
    %346 = vector.broadcast %345 : vector<16x1xf32> to vector<16x32xf32>
    %347 = arith.mulf %337, %346 : vector<16x32xf32>
    %348 = vector.broadcast %330 : vector<1x32xf32> to vector<16x32xf32>
    %349 = arith.mulf %347, %348 : vector<16x32xf32>
    %350 = vector.broadcast %331 : vector<1x32xf32> to vector<16x32xf32>
    %351 = arith.addf %349, %350 : vector<16x32xf32>
    %c0_209 = arith.constant 0 : index
    %c0_210 = arith.constant 0 : index
    %352 = vector.load %arg11[%c0_209, %c0_210] : memref<32x128xf32, #tpu.memory_space<vmem>>, vector<32x128xf32>
    %cst_211 = arith.constant dense<0.000000e+00> : vector<16x128xf32>
    %353 = tpu.matmul %351, %352, %cst_211 {dimension_numbers = #tpu.dot_dimension_numbers<[1], [0], [0], [1], [0, 0, 1, 1], [], []>} : vector<16x32xf32>, vector<32x128xf32>, vector<16x128xf32> -> vector<16x128xf32>
    %c0_212 = arith.constant 0 : index
    %c0_213 = arith.constant 0 : index
    %354 = vector.load %arg12[%c0_212, %c0_213] : memref<1x128xf32, #tpu.memory_space<vmem>>, vector<1x128xf32>
    %355 = vector.broadcast %354 : vector<1x128xf32> to vector<16x128xf32>
    %356 = arith.addf %353, %355 : vector<16x128xf32>
    %c0_214 = arith.constant 0 : index
    %c0_215 = arith.constant 0 : index
    %357 = vector.load %arg13[%c0_214, %c0_215] : memref<16x128xf32, #tpu.memory_space<vmem>>, vector<16x128xf32>
    tpu.vector_store %arg13[%c0_214, %c0_215], %356 {strides = array<i32>} : memref<16x128xf32, #tpu.memory_space<vmem>>, vector<16x128xf32>,
    return
  }
  func.func @transform_0(%arg0: i32) -> (i32, i32) {
    %c0_i32 = arith.constant 0 : i32
    %c0_i32_0 = arith.constant 0 : i32
    %c0_i32_1 = arith.constant 0 : i32
    return %c0_i32, %c0_i32_0 : i32, i32
  }
  func.func @transform_1(%arg0: i32) -> (i32, i32) {
    %c0_i32 = arith.constant 0 : i32
    %c0_i32_0 = arith.constant 0 : i32
    %c0_i32_1 = arith.constant 0 : i32
    return %c0_i32, %c0_i32_0 : i32, i32
  }
  func.func @transform_2(%arg0: i32) -> (i32, i32) {
    %c0_i32 = arith.constant 0 : i32
    %c0_i32_0 = arith.constant 0 : i32
    %c0_i32_1 = arith.constant 0 : i32
    return %c0_i32, %c0_i32_0 : i32, i32
  }
  func.func @transform_3(%arg0: i32) -> (i32, i32) {
    %c0_i32 = arith.constant 0 : i32
    %c0_i32_0 = arith.constant 0 : i32
    %c0_i32_1 = arith.constant 0 : i32
    return %c0_i32, %c0_i32_0 : i32, i32
  }
  func.func @transform_4(%arg0: i32) -> (i32, i32, i32) {
    %c0_i32 = arith.constant 0 : i32
    %c0_i32_0 = arith.constant 0 : i32
    %c0_i32_1 = arith.constant 0 : i32
    %c0_i32_2 = arith.constant 0 : i32
    return %c0_i32, %c0_i32_0, %c0_i32_1 : i32, i32, i32
  }
  func.func @transform_5(%arg0: i32) -> (i32, i32, i32) {
    %c0_i32 = arith.constant 0 : i32
    %c0_i32_0 = arith.constant 0 : i32
    %c0_i32_1 = arith.constant 0 : i32
    %c0_i32_2 = arith.constant 0 : i32
    return %c0_i32, %c0_i32_0, %c0_i32_1 : i32, i32, i32
  }
  func.func @transform_6(%arg0: i32) -> (i32, i32, i32) {
    %c0_i32 = arith.constant 0 : i32
    %c0_i32_0 = arith.constant 0 : i32
    %c0_i32_1 = arith.constant 0 : i32
    %c0_i32_2 = arith.constant 0 : i32
    return %c0_i32, %c0_i32_0, %c0_i32_1 : i32, i32, i32
  }
  func.func @transform_7(%arg0: i32) -> (i32, i32, i32) {
    %c0_i32 = arith.constant 0 : i32
    %c0_i32_0 = arith.constant 0 : i32
    %c0_i32_1 = arith.constant 0 : i32
    %c0_i32_2 = arith.constant 0 : i32
    return %c0_i32, %c0_i32_0, %c0_i32_1 : i32, i32, i32
  }
  func.func @transform_8(%arg0: i32) -> (i32, i32) {
    %c0_i32 = arith.constant 0 : i32
    %c0_i32_0 = arith.constant 0 : i32
    %c0_i32_1 = arith.constant 0 : i32
    return %c0_i32, %c0_i32_0 : i32, i32
  }
  func.func @transform_9(%arg0: i32) -> (i32, i32, i32) {
    %c0_i32 = arith.constant 0 : i32
    %c0_i32_0 = arith.constant 0 : i32
    %c0_i32_1 = arith.constant 0 : i32
    %c0_i32_2 = arith.constant 0 : i32
    return %c0_i32, %c0_i32_0, %c0_i32_1 : i32, i32, i32
  }
  func.func @transform_10(%arg0: i32) -> (i32, i32) {
    %c0_i32 = arith.constant 0 : i32
    %c0_i32_0 = arith.constant 0 : i32
    %c0_i32_1 = arith.constant 0 : i32
    return %c0_i32, %c0_i32_0 : i32, i32
  }
  func.func @transform_11(%arg0: i32) -> (i32, i32) {
    %c0_i32 = arith.constant 0 : i32
    %c0_i32_0 = arith.constant 0 : i32
    %c0_i32_1 = arith.constant 0 : i32
    return %c0_i32, %c0_i32_0 : i32, i32
  }
  func.func @transform_12(%arg0: i32) -> (i32, i32) {
    %c0_i32 = arith.constant 0 : i32
    %c0_i32_0 = arith.constant 0 : i32
    %c0_i32_1 = arith.constant 0 : i32
    return %c0_i32, %c0_i32_0 : i32, i32
  }
}

</mosaic_0001>

<bundles_post_ra>
// kernel: time_series_transformer.1
= control target key start
LH: loop header
LB: loop body
LE: loop exit
PB: predicated region body
PF: predicated region fallthrough
CT: control target
= control target key end

     0   :  { %17 = vsyncpa [#allocation4], 0  ;;  %s4962_s0 = inlined_call_operand.vmem [shape: f32[16,4], index: 0, kind: input, shape index: {}]   ;;  %s4963_s1 = inlined_call_operand.hbm [shape: f32[16,32], index: 1, kind: input, shape index: {}]   ;;  %s4964_s2 = inlined_call_operand.hbm [shape: f32[16,16], index: 2, kind: input, shape index: {}]   ;;  %s4965_s3 = inlined_call_operand.vmem [shape: f32[4,32], index: 3, kind: input, shape index: {}]   ;;  %s4966_s4 = inlined_call_operand.vmem [shape: f32[6,32,32], index: 4, kind: input, shape index: {}]   ;;  %s4967_s5 = inlined_call_operand.vmem [shape: f32[2,32,32], index: 5, kind: input, shape index: {}]   ;;  %s4968_s6 = inlined_call_operand.vmem [shape: f32[2,9,32], index: 6, kind: input, shape index: {}]   ;;  %s4969_s7 = inlined_call_operand.vmem [shape: f32[2,32,128], index: 7, kind: input, shape index: {}]   ;;  %s4970_s8 = inlined_call_operand.vmem [shape: f32[2,128], index: 8, kind: input, shape index: {}]   ;;  %s4971_s9 = inlined_call_operand.vmem [shape: f32[2,128,32], index: 9, kind: input, shape index: {}]   ;;  %s4972_s10 = inlined_call_operand.vmem [shape: f32[32,128], index: 10, kind: input, shape index: {}]   ;;  %s4973_s11 = inlined_call_operand.vmem [shape: f32[1,128], index: 11, kind: input, shape index: {}]   ;;  %s4974_s12 = inlined_call_operand.vmem [shape: f32[16,128], index: 12, kind: output, shape index: {}]  }
   0x1   :  { %18 = vsyncpa [#allocation6], 0  ;;  %s4244_s21 = smov [#allocation3]   ;;  %s4196_s25 = scalar_lea.hbm %s4963_s1, 256 }
   0x2   :  { %s26_s22 = sshll.u32 %s4244_s21, 4  ;;  %p4197_p0 = scmp.ne.s32.totalorder %s4963_s1, %s4196_s25  ;;  %s27_s22 = int_to_ptr.vmem [resolvable:$true] %s26_s22 }
   0x3   :  { %p4200_p1 = scmp.lt.u32.totalorder %s4196_s25, %s4963_s1 }
   0x5   :  { %p4202_p2 = pnand %p4200_p1, %p4197_p0 }
   0x7   :  { %4205 = shalt.err (!%p4202_p2)
}
   0x8   :  { %s4206_s30 = scalar_lea.vmem %s27_s22, 256  ;;  %p4211_p4 = scmp.lt.s32.totalorder %s27_s22, %s27_s22 }
   0x9   :  { %p4207_p3 = scmp.ne.s32.totalorder %s27_s22, %s4206_s30  ;;  %p4212_p5 = scmp.lt.s32.totalorder %s4206_s30, %s4206_s30 }
   0xb   :  { %p4213_p6 = por %p4212_p5, %p4211_p4 }
   0xd   :  { %p4214_p7 = pnand %p4213_p6, %p4207_p3 }
   0xf   :  { %4217 = shalt.err (!%p4214_p7)
}
  0x10   :  { %s4245_s13 = smov 128   ;;  %s4246_s14 = smov 8  }
  0x11   :  { %32 = dma.hbm_to_vmem [thread:$0]  %s4963_s1, 256, %s27_s22, [#allocation4], %s4245_s13, %s4245_s13, %s4246_s14  }
  0x12   :  { %s4247_s17 = smov [#allocation5]   ;;  %s4218_s21 = scalar_lea.hbm %s4964_s2, 256 }
  0x13   :  { %s38_s18 = sshll.u32 %s4247_s17, 4  ;;  %p4219_p8 = scmp.ne.s32.totalorder %s4964_s2, %s4218_s21  ;;  %s39_s18 = int_to_ptr.vmem [resolvable:$true] %s38_s18 }
  0x14   :  { %p4222_p9 = scmp.lt.u32.totalorder %s4218_s21, %s4964_s2 }
  0x16   :  { %p4224_p10 = pnand %p4222_p9, %p4219_p8 }
  0x18   :  { %4227 = shalt.err (!%p4224_p10)
}
  0x19   :  { %s4228_s27 = scalar_lea.vmem %s39_s18, 256  ;;  %p4233_p12 = scmp.lt.s32.totalorder %s39_s18, %s39_s18 }
  0x1a   :  { %p4229_p11 = scmp.ne.s32.totalorder %s39_s18, %s4228_s27  ;;  %p4234_p13 = scmp.lt.s32.totalorder %s4228_s27, %s4228_s27 }
  0x1c   :  { %p4235_p0 = por %p4234_p13, %p4233_p12 }
  0x1e   :  { %p4236_p1 = pnand %p4235_p0, %p4229_p11 }
  0x20   :  { %4239 = shalt.err (!%p4236_p1)
}
  0x21   :  { %44 = dma.hbm_to_vmem [thread:$0]  %s4964_s2, 256, %s39_s18, [#allocation6], %s4245_s13, %s4245_s13, %s4246_s14  }
  0x22   :  { %4240 = dma.done.wait [#allocation4], 256  }
  0x23   :  { %4241 = vsyncadd [#allocation4], 4294967040 }
  0x24   :  { %4242 = dma.done.wait [#allocation6], 256  }
  0x25   :  { %4243 = vsyncadd [#allocation6], 4294967040  ;;  %vm81_vm0 = vcmask 1043456   ;;  %vm74_vm1 = vcmask 31744   ;;  %v71_v0 = vld [vmem:[%s4965_s3] sm:$0xf]  ;;  %v168_v27 = vlaneseq }
  0x26   :  { %v69_v1 = vld [vmem:[%s4962_s0] sm:$0xff]  ;;  %v70_v2 = vld [vmem:[%s4962_s0 + $0x8] sm:$0xff]  ;;  %3507 = vmatprep.subr.msk.mxu0 %vm81_vm0, %v71_v0  ;;  %v166_v9 = vld [vmem:[%s4966_s4 + $0x10] sm:$0xff]  ;;  %vm172_vm2 = vcmask 261120   ;;  %vm484_vm3 = vcmask 64512   ;;  %s4248_s3 = smov 104  }
  0x27   :  { %3509 = vmatprep.mubr.msk.f32.mxu0 %vm74_vm1, %v69_v1  ;;  %v164_v3 = vld [vmem:[%s4966_s4] sm:$0xff]  ;;  %v165_v4 = vld [vmem:[%s4966_s4 + $0x8] sm:$0xff]  ;;  %3508 = vmatpush3.msk.msra.mxu0 %vm81_vm0, %v71_v0  ;;  %v167_v10 = vld [vmem:[%s4966_s4 + $0x18] sm:$0xff]  ;;  %v4405_v28 = vshrl.u32 %v168_v27, 7  ;;  %s4249_s21 = smov 120   ;;  %s4250_s23 = smov 112  }
  0x28   :  { %v3225_v5 = vld [vmem:[%s4966_s4 + $0x40] sm:$0xff]  ;;  %v3815_v6 = vpack.c.bf16 %v165_v4, %v164_v3  ;;  %v3226_v7 = vld [vmem:[%s4966_s4 + $0x48] sm:$0xff]  ;;  %3510 = vmatmul.mubr.msk.f32.vlgmr.msra.gmra.mrb[0].mxu0 %vm74_vm1, %v70_v2  ;;  %v3819_v11 = vpack.c.bf16 %v167_v10, %v166_v9  ;;  %v3227_v12 = vld [vmem:[%s4966_s4 + $0x50] sm:$0xff]  ;;  %vm833_vm5 = vcmask 130048   ;;  %s4251_s29 = smov 16   ;;  %s4252_s30 = smov 24  }
  0x29   :  { %v3831_v8 = vpack.c.bf16 %v3226_v7, %v3225_v5  ;;  %v3228_v13 = vld [vmem:[%s4966_s4 + $0x58] sm:$0xff]  ;;  %v3219_v15 = vld [vmem:[%s4966_s4 + $0x20] sm:$0xff]  ;;  %v3220_v16 = vld [vmem:[%s4966_s4 + $0x28] sm:$0xff]  ;;  %v170_v29 = vsub.s32 0, %v4405_v28  ;;  %v345_v30 = vsub.s32 2, %v4405_v28  ;;  %v261_v40 = vsub.s32 1, %v4405_v28 }
  0x2a   :  { %3816 = vmatprep.subr.bf16.mxu0 %v3815_v6  ;;  %v3835_v14 = vpack.c.bf16 %v3228_v13, %v3227_v12  ;;  %v3823_v17 = vpack.c.bf16 %v3220_v16, %v3219_v15  ;;  %v72_v18 = vld [vmem:[#allocation3] sm:$0xff]  ;;  %v73_v19 = vld [vmem:[#allocation3 + $0x8] sm:$0xff]  ;;  %v4412_v31 = vld [vmem:[%s4968_s6] sm:$0xff]  ;;  %vm1256_vm6 = vcmask 130112   ;;  %vm1267_vm7 = vcmask 195712  }
  0x2b   :  { %3818 = vmatpush3.bf16.msra.mxu0 %v3815_v6  ;;  %3832 = vmatprep.subr.bf16.mxu1 %v3831_v8  ;;  %v3221_v21 = vld [vmem:[%s4966_s4 + $0x30] sm:$0xff]  ;;  %v3222_v22 = vld [vmem:[%s4966_s4 + $0x38] sm:$0xff]  ;;  %v171_v32 = vrot.slane %v4412_v31, %v170_v29  ;;  %v346_v33 = vrot.slane %v4412_v31, %v345_v30  ;;  %v262_v43 = vrot.slane %v4412_v31, %v261_v40  ;;  %vm4433_vm4 = vmpackc.low %vm484_vm3, %vm484_vm3  ;;  %vm1278_vm8 = vcmask 261312  }
  0x2c   :  { %3834 = vmatpush3.bf16.msra.mxu1 %v3831_v8  ;;  %3820 = vmatprep.subr.bf16.mxu0 %v3819_v11  ;;  %v3827_v26 = vpack.c.bf16 %v3222_v22, %v3221_v21  ;;  %v4475_v13 = vld [vmem:[#allocation5 + $0x8] sm:$0xff]  ;;  %v4477_v16 = vld [vmem:[#allocation5] sm:$0xff] }
  0x2d   :  { %3836 = vmatprep.subr.bf16.mxu1 %v3835_v14 }
  0x2f   :  { %3822 = vmatpush3.bf16.msra.mxu0 %v3819_v11 }
  0x30   :  { %3838 = vmatpush3.bf16.msra.mxu1 %v3835_v14  ;;  %3824 = vmatprep.subr.bf16.mxu0 %v3823_v17 }
  0xfb   :  { %v3511_v20 = vpop.f32.mrb[0].mxu0 }
  0xfc   :  { %v151_v23 = vpop.f32.mrb[1].mxu0  ;;  %v4391_v25 = vadd.f32 %v3511_v20, %v73_v19 }
  0xfd   :  { %v4389_v24 = vadd.f32 %v151_v23, %v72_v18 }
  0xff   :  { %3520 = vmatprep.mubr.msk.f32.mxu0 %vm172_vm2, %v4389_v24  ;;  %3542 = vmatprep.mubr.msk.f32.mxu1 %vm172_vm2, %v4389_v24 }
 0x100   :  { %3521 = vmatmul.mubr.msk.f32.vlgmr.msra.gmra.mrb[2].mxu0 %vm172_vm2, %v4391_v25  ;;  %3543 = vmatmul.mubr.msk.f32.vlgmr.msra.gmra.mrb[0].mxu1 %vm172_vm2, %v4391_v25 }
 0x101   :  { %3826 = vmatpush3.bf16.msra.mxu0 %v3823_v17  ;;  %3531 = vmatprep.mubr.msk.f32.mxu0 %vm172_vm2, %v4389_v24 }
 0x102   :  { %3828 = vmatprep.subr.bf16.mxu0 %v3827_v26 }
 0x105   :  { %3830 = vmatpush3.bf16.msra.mxu0 %v3827_v26 }
 0x108   :  { %3532 = vmatmul.mubr.msk.f32.vlgmr.msra.gmra.mrb[4].mxu0 %vm172_vm2, %v4391_v25 }
 0x1d3   :  { %v3522_v34 = vpop.f32.mrb[2].mxu0  ;;  %v3544_v35 = vpop.f32.mrb[0].mxu1 }
 0x1d4   :  { %v251_v36 = vadd.f32 %v3522_v34, %v171_v32  ;;  %v419_v37 = vadd.f32 %v3544_v35, %v346_v33  ;;  %v245_v38 = vpop.f32.mrb[3].mxu0  ;;  %v413_v39 = vpop.f32.mrb[1].mxu1 }
 0x1d5   :  { %v246_v41 = vadd.f32 %v245_v38, %v171_v32  ;;  %v414_v42 = vadd.f32 %v413_v39, %v346_v33 }
 0x1d6   :  { %423 = vst.msk [vmem:[#allocation2 + $0x8] sm:$0xff] %vm172_vm2, %v251_v36  ;;  %429 = vst.msk [vmem:[#allocation2 + $0x28] sm:$0xff] %vm172_vm2, %v419_v37 }
 0x1d7   :  { %422 = vst.msk [vmem:[#allocation2] sm:$0xff] %vm172_vm2, %v246_v41  ;;  %428 = vst.msk [vmem:[#allocation2 + $0x20] sm:$0xff] %vm172_vm2, %v414_v42 }
 0x1db   :  { %v3533_v44 = vpop.f32.mrb[4].mxu0 }
 0x1dc   :  { %v335_v45 = vadd.f32 %v3533_v44, %v262_v43  ;;  %v329_v46 = vpop.f32.mrb[5].mxu0 }
 0x1dd   :  { %v330_v47 = vadd.f32 %v329_v46, %v262_v43  ;;  %v431_v54 = vld [vmem:[#allocation2 + $0x8] sm:$0xff] }
 0x1de   :  { %426 = vst.msk [vmem:[#allocation2 + $0x18] sm:$0xff] %vm172_vm2, %v335_v45  ;;  %v430_v48 = vld [vmem:[#allocation2] sm:$0xff]  ;;  %v4458_v4 = vld [vmem:[#allocation2 + $0x28] sm:$0xff] }
 0x1df   :  { %425 = vst.msk [vmem:[#allocation2 + $0x10] sm:$0xff] %vm172_vm2, %v330_v47  ;;  %3549 = vmatprep.mubr.msk.f32.mxu0 %vm484_vm3, %v430_v48  ;;  %v4456_v3 = vld [vmem:[#allocation2 + $0x20] sm:$0xff] }
 0x1e0   :  { %v3863_v8 = vpack.c.bf16 %v4458_v4, %v4456_v3 }
 0x1e5   :  { %v447_v49 = vld [vmem:[#allocation2 + $0x18] sm:$0xff] }
 0x1e6   :  { %v446_v50 = vld [vmem:[#allocation2 + $0x10] sm:$0xff] }
 0x1e7   :  { %v4066_v51 = vpack.i.bf16 %v447_v49, %v446_v50  ;;  %v3839_v52 = vpack.c.bf16 %v447_v49, %v446_v50 }
 0x1e9   :  { %4067 = vrot.lane.b32.xlu1 %v4066_v51, %s4248_s3  ;;  %4057 = vrot.lane.b32.xlu0 %v4066_v51, %s4249_s21 }
 0x1ea   :  { %3841 = vmatprep.subr.msk.bf16.mxu0 %vm4433_vm4, %v3839_v52 }
 0x1eb   :  { %3844 = vmatpush3.bf16.xpose.msk.msra.mxu0 %vm4433_vm4, %v3839_v52 }
 0x1ed   :  { %4062 = vrot.lane.b32.xlu0 %v4066_v51, %s4250_s23  ;;  %434 = vrot.lane.b32.xlu1 %v430_v48, %s4249_s21 }
 0x1f1   :  { %436 = vrot.lane.b32.xlu0 %v431_v54, %s4249_s21  ;;  %438 = vrot.lane.b32.xlu1 %v430_v48, %s4250_s23 }
 0x1f2   :  { %3550 = vmatmul.mubr.msk.f32.vlgmr.msra.gmra.mrb[6].mxu0 %vm484_vm3, %v431_v54 }
 0x1f5   :  { %440 = vrot.lane.b32.xlu0 %v431_v54, %s4250_s23  ;;  %442 = vrot.lane.b32.xlu1 %v430_v48, %s4248_s3 }
 0x1f9   :  { %444 = vrot.lane.b32.xlu0 %v431_v54, %s4248_s3 }
 0x25b   :  { %v4068_v55 = vpop.permute.xlu1 %4067  ;;  %v4058_v56 = vpop.permute.xlu0 %4057 }
 0x25c   :  { %v4070_v57 = vunpack.i.h.bf16 %v4068_v55  ;;  %v4069_v58 = vunpack.i.l.bf16 %v4068_v55  ;;  %v4060_v59 = vunpack.i.h.bf16 %v4058_v56  ;;  %v4059_v60 = vunpack.i.l.bf16 %v4058_v56 }
 0x25e   :  { %v3845_v61 = vpack.c.bf16 %v4060_v59, %v4059_v60  ;;  %v3857_v0 = vpack.c.bf16 %v4070_v57, %v4069_v58 }
 0x25f   :  { %v4063_v62 = vpop.permute.xlu0 %4062  ;;  %v435_v63 = vpop.permute.xlu1 %434 }
 0x260   :  { %v4065_v1 = vunpack.i.h.bf16 %v4063_v62  ;;  %v4064_v2 = vunpack.i.l.bf16 %v4063_v62  ;;  %3847 = vmatprep.subr.msk.bf16.mxu1 %vm4433_vm4, %v3845_v61  ;;  %3556 = vmatprep.mubr.msk.f32.mxu1 %vm484_vm3, %v435_v63 }
 0x261   :  { %3850 = vmatpush3.bf16.xpose.msk.msra.mxu1 %vm4433_vm4, %v3845_v61 }
 0x262   :  { %v3851_v5 = vpack.c.bf16 %v4065_v1, %v4064_v2  ;;  %3859 = vmatprep.subr.msk.bf16.mxu1 %vm4433_vm4, %v3857_v0 }
 0x263   :  { %v437_v6 = vpop.permute.xlu0 %436  ;;  %v439_v7 = vpop.permute.xlu1 %438 }
 0x264   :  { %3853 = vmatprep.subr.msk.bf16.mxu0 %vm4433_vm4, %v3851_v5  ;;  %3563 = vmatprep.mubr.msk.f32.mxu0 %vm484_vm3, %v439_v7 }
 0x265   :  { %3856 = vmatpush3.bf16.xpose.msk.msra.mxu0 %vm4433_vm4, %v3851_v5 }
 0x266   :  { %3864 = vmatprep.subr.bf16.mxu0 %v3863_v8 }
 0x267   :  { %v443_v9 = vpop.permute.xlu1 %442  ;;  %v441_v10 = vpop.permute.xlu0 %440 }
 0x268   :  { %3557 = vmatmul.mubr.msk.f32.vlgmr.msra.gmra.mrb[2].mxu1 %vm484_vm3, %v437_v6 }
 0x269   :  { %3862 = vmatpush3.bf16.xpose.msk.msra.mxu1 %vm4433_vm4, %v3857_v0  ;;  %3570 = vmatprep.mubr.msk.f32.mxu1 %vm484_vm3, %v443_v9 }
 0x26b   :  { %v445_v11 = vpop.permute.xlu0 %444 }
 0x26c   :  { %3564 = vmatmul.mubr.msk.f32.vlgmr.msra.gmra.mrb[8].mxu0 %vm484_vm3, %v441_v10 }
 0x26d   :  { %3866 = vmatpush3.bf16.msra.mxu0 %v3863_v8 }
 0x270   :  { %3571 = vmatmul.mubr.msk.f32.vlgmr.msra.gmra.mrb[4].mxu1 %vm484_vm3, %v445_v11 }
 0x2c5   :  { %v3551_v12 = vpop.f32.mrb[6].mxu0 }
 0x2c6   :  { %v818_v14 = vmul.f32 0.35355338, %v3551_v12  ;;  %v559_v15 = vpop.f32.mrb[7].mxu0 }
 0x2c7   :  { %v817_v17 = vmul.f32 0.35355338, %v559_v15 }
 0x2c8   :  { %v826_v18 = vadd.f32 %v818_v14, %v4475_v13 }
 0x2c9   :  { %v825_v19 = vadd.f32 %v817_v17, %v4477_v16 }
 0x2ca   :  { %v837_v20 = vsel %vm833_vm5, %v826_v18, -inf }
 0x2cb   :  { %838 = vmax.xlane.f32.xlu0 %v837_v20  ;;  %v834_v21 = vsel %vm833_vm5, %v825_v19, -inf }
 0x2cc   :  { %835 = vmax.xlane.f32.xlu1 %v834_v21 }
 0x33b   :  { %v3558_v22 = vpop.f32.mrb[2].mxu1 }
 0x33c   :  { %v820_v23 = vmul.f32 0.35355338, %v3558_v22  ;;  %v642_v26 = vpop.f32.mrb[3].mxu1 }
 0x33d   :  { %v819_v27 = vmul.f32 0.35355338, %v642_v26 }
 0x33e   :  { %v828_v32 = vadd.f32 %v820_v23, %v4475_v13 }
 0x33f   :  { %v3565_v33 = vpop.f32.mrb[8].mxu0  ;;  %v827_v34 = vadd.f32 %v819_v27, %v4477_v16 }
 0x340   :  { %v822_v35 = vmul.f32 0.35355338, %v3565_v33  ;;  %v725_v36 = vpop.f32.mrb[9].mxu0  ;;  %v843_v37 = vsel %vm833_vm5, %v828_v32, -inf }
 0x341   :  { %v821_v38 = vmul.f32 0.35355338, %v725_v36  ;;  %844 = vmax.xlane.f32.xlu1 %v843_v37  ;;  %v840_v39 = vsel %vm833_vm5, %v827_v34, -inf }
 0x342   :  { %841 = vmax.xlane.f32.xlu0 %v840_v39  ;;  %v830_v41 = vadd.f32 %v822_v35, %v4475_v13 }
 0x343   :  { %v3572_v42 = vpop.f32.mrb[4].mxu1  ;;  %v829_v43 = vadd.f32 %v821_v38, %v4477_v16 }
 0x344   :  { %v824_v44 = vmul.f32 0.35355338, %v3572_v42  ;;  %v808_v45 = vpop.f32.mrb[5].mxu1  ;;  %v849_v46 = vsel %vm833_vm5, %v830_v41, -inf  ;;  %v4076_v42 = vpack.i.bf16 %v4458_v4, %v4456_v3 }
 0x345   :  { %v823_v47 = vmul.f32 0.35355338, %v808_v45  ;;  %850 = vmax.xlane.f32.xlu1 %v849_v46  ;;  %v846_v48 = vsel %vm833_vm5, %v829_v43, -inf }
 0x346   :  { %847 = vmax.xlane.f32.xlu0 %v846_v48  ;;  %v832_v49 = vadd.f32 %v824_v44, %v4475_v13 }
 0x347   :  { %v831_v50 = vadd.f32 %v823_v47, %v4477_v16 }
 0x348   :  { %v855_v51 = vsel %vm833_vm5, %v832_v49, -inf }
 0x349   :  { %856 = vmax.xlane.f32.xlu1 %v855_v51  ;;  %v852_v52 = vsel %vm833_vm5, %v831_v50, -inf }
 0x34a   :  { %853 = vmax.xlane.f32.xlu0 %v852_v52 }
 0x358   :  { %v839_v54 = vpop.xlane.xlu0 %838 }
 0x359   :  { %v859_v55 = vsub.f32 %v826_v18, %v839_v54  ;;  %v836_v56 = vpop.xlane.xlu1 %835 }
 0x35a   :  { %v858_v57 = vsub.f32 %v825_v19, %v836_v56 }
 0x35b   :  { %v868_v58 = vmul.f32 1.442695, %v859_v55 }
 0x35c   :  { %v866_v59 = vmul.f32 1.442695, %v858_v57 }
 0x35d   :  { %4116 = vpow2.f32 %v868_v58 }
 0x35e   :  { %4118 = vpow2.f32 %v866_v59 }
 0x367   :  { %v4117_v60 = vpop.eup %4116 }
 0x368   :  { %v4119_v61 = vpop.eup %4118  ;;  %v885_v62 = vsel %vm833_vm5, %v4117_v60, 0.0 }
 0x369   :  { %886 = vadd.xlane.f32.xlu1 %v885_v62  ;;  %v882_v63 = vsel %vm833_vm5, %v4119_v61, 0.0 }
 0x36a   :  { %883 = vadd.xlane.f32.xlu0 %v882_v63 }
 0x3ce   :  { %v845_v0 = vpop.xlane.xlu1 %844 }
 0x3cf   :  { %v861_v1 = vsub.f32 %v828_v32, %v845_v0  ;;  %v842_v2 = vpop.xlane.xlu0 %841 }
 0x3d0   :  { %v860_v5 = vsub.f32 %v827_v34, %v842_v2 }
 0x3d1   :  { %v872_v6 = vmul.f32 1.442695, %v861_v1 }
 0x3d2   :  { %v870_v7 = vmul.f32 1.442695, %v860_v5  ;;  %v851_v8 = vpop.xlane.xlu1 %850 }
 0x3d3   :  { %4120 = vpow2.f32 %v872_v6  ;;  %v863_v9 = vsub.f32 %v830_v41, %v851_v8  ;;  %v848_v10 = vpop.xlane.xlu0 %847 }
 0x3d4   :  { %4122 = vpow2.f32 %v870_v7  ;;  %v862_v11 = vsub.f32 %v829_v43, %v848_v10 }
 0x3d5   :  { %v876_v12 = vmul.f32 1.442695, %v863_v9 }
 0x3d6   :  { %v874_v14 = vmul.f32 1.442695, %v862_v11  ;;  %v857_v15 = vpop.xlane.xlu1 %856 }
 0x3d7   :  { %4124 = vpow2.f32 %v876_v12  ;;  %v865_v17 = vsub.f32 %v832_v49, %v857_v15  ;;  %v854_v18 = vpop.xlane.xlu0 %853 }
 0x3d8   :  { %4126 = vpow2.f32 %v874_v14  ;;  %v864_v19 = vsub.f32 %v831_v50, %v854_v18 }
 0x3d9   :  { %v880_v20 = vmul.f32 1.442695, %v865_v17 }
 0x3da   :  { %v878_v21 = vmul.f32 1.442695, %v864_v19  ;;  %v1283_v19 = vld [vmem:[%s4967_s5] sm:$0xff] }
 0x3db   :  { %4128 = vpow2.f32 %v880_v20  ;;  %v1284_v20 = vld [vmem:[%s4967_s5 + $0x8] sm:$0xff] }
 0x3dc   :  { %4130 = vpow2.f32 %v878_v21  ;;  %v3879_v21 = vpack.c.bf16 %v1284_v20, %v1283_v19  ;;  %v1512_v19 = vld [vmem:[%s4971_s9 + $0x38] sm:$0xff] }
 0x3dd   :  { %v4121_v22 = vpop.eup %4120 }
 0x3de   :  { %v4123_v23 = vpop.eup %4122  ;;  %v891_v26 = vsel %vm833_vm5, %v4121_v22, 0.0  ;;  %3880 = vmatprep.subr.bf16.mxu1 %v3879_v21 }
 0x3df   :  { %892 = vadd.xlane.f32.xlu1 %v891_v26  ;;  %v888_v27 = vsel %vm833_vm5, %v4123_v23, 0.0  ;;  %3882 = vmatpush3.bf16.msra.mxu1 %v3879_v21  ;;  %v1513_v21 = vld [vmem:[%s4971_s9 + $0x40] sm:$0xff] }
 0x3e0   :  { %889 = vadd.xlane.f32.xlu0 %v888_v27 }
 0x3e1   :  { %v4499_v32 = vpop.eup %4124 }
 0x3e2   :  { %v4127_v33 = vpop.eup %4126  ;;  %v897_v34 = vsel %vm833_vm5, %v4499_v32, 0.0 }
 0x3e3   :  { %898 = vadd.xlane.f32.xlu1 %v897_v34  ;;  %v894_v35 = vsel %vm833_vm5, %v4127_v33, 0.0 }
 0x3e4   :  { %895 = vadd.xlane.f32.xlu0 %v894_v35 }
 0x3e5   :  { %v4504_v36 = vpop.eup %4128 }
 0x3e6   :  { %v4131_v37 = vpop.eup %4130  ;;  %v903_v38 = vsel %vm833_vm5, %v4504_v36, 0.0 }
 0x3e7   :  { %904 = vadd.xlane.f32.xlu1 %v903_v38  ;;  %v900_v39 = vsel %vm833_vm5, %v4131_v37, 0.0 }
 0x3e8   :  { %901 = vadd.xlane.f32.xlu0 %v900_v39 }
 0x3f6   :  { %v887_v41 = vpop.xlane.xlu1 %886 }
 0x3f7   :  { %4132 = vrcp.f32 %v887_v41  ;;  %v884_v43 = vpop.xlane.xlu0 %883 }
 0x3f8   :  { %4134 = vrcp.f32 %v884_v43  ;;  %4077 = vrot.lane.b32.xlu1 %v4076_v42, %s4250_s23 }
 0x3fc   :  { %4082 = vrot.lane.b32.xlu1 %v4076_v42, %s4248_s3 }
 0x3fe   :  { %4072 = vrot.lane.b32.xlu0 %v4076_v42, %s4249_s21 }
 0x401   :  { %v4133_v44 = vpop.eup %4132 }
 0x402   :  { %v4135_v45 = vpop.eup %4134  ;;  %v915_v47 = vmul.f32 %v4133_v44, %v4117_v60 }
 0x403   :  { %v914_v46 = vmul.f32 %v4135_v45, %v4119_v61 }
 0x405   :  { %3577 = vmatprep.mubr.msk.f32.mxu0 %vm833_vm5, %v914_v46  ;;  %v1289_v46 = vsub.s32 3, %v4405_v28 }
 0x406   :  { %3578 = vmatmul.mubr.msk.f32.vlgmr.msra.gmra.mrb[10].mxu0 %vm833_vm5, %v915_v47 }
 0x407   :  { %v1290_v47 = vrot.slane %v4412_v31, %v1289_v46 }
 0x46c   :  { %v893_v48 = vpop.xlane.xlu1 %892 }
 0x46d   :  { %v890_v49 = vpop.xlane.xlu0 %889 }
 0x46e   :  { %4136 = vrcp.f32 %v890_v49 }
 0x46f   :  { %4138 = vrcp.f32 %v893_v48 }
 0x470   :  { %v899_v3 = vpop.xlane.xlu1 %898 }
 0x471   :  { %v896_v4 = vpop.xlane.xlu0 %895 }
 0x472   :  { %4140 = vrcp.f32 %v896_v4 }
 0x473   :  { %4142 = vrcp.f32 %v899_v3 }
 0x474   :  { %v905_v50 = vpop.xlane.xlu1 %904 }
 0x475   :  { %v902_v51 = vpop.xlane.xlu0 %901 }
 0x476   :  { %4144 = vrcp.f32 %v902_v51 }
 0x477   :  { %4146 = vrcp.f32 %v905_v50 }
 0x478   :  { %v4137_v52 = vpop.eup %4136  ;;  %v4078_v54 = vpop.permute.xlu1 %4077 }
 0x479   :  { %v4073_v55 = vpop.permute.xlu0 %4072  ;;  %v916_v56 = vmul.f32 %v4137_v52, %v4123_v23  ;;  %v4080_v57 = vunpack.i.h.bf16 %v4078_v54  ;;  %v4079_v58 = vunpack.i.l.bf16 %v4078_v54  ;;  %v4139_v63 = vpop.eup %4138  ;;  %v1286_v23 = vld [vmem:[%s4967_s5 + $0x18] sm:$0xff] }
 0x47a   :  { %v4075_v59 = vunpack.i.h.bf16 %v4073_v55  ;;  %v4074_v60 = vunpack.i.l.bf16 %v4073_v55  ;;  %v917_v6 = vmul.f32 %v4139_v63, %v4121_v22  ;;  %v1285_v22 = vld [vmem:[%s4967_s5 + $0x10] sm:$0xff]  ;;  %v1413_v63 = vld [vmem:[%s4969_s7] sm:$0xff] }
 0x47b   :  { %3584 = vmatprep.mubr.msk.f32.mxu0 %vm833_vm5, %v916_v56  ;;  %v3871_v1 = vpack.c.bf16 %v4080_v57, %v4079_v58  ;;  %v3883_v26 = vpack.c.bf16 %v1286_v23, %v1285_v22  ;;  %v1514_v22 = vld [vmem:[%s4971_s9 + $0x48] sm:$0xff] }
 0x47c   :  { %v3867_v61 = vpack.c.bf16 %v4075_v59, %v4074_v60  ;;  %v4083_v62 = vpop.permute.xlu1 %4082  ;;  %v4141_v0 = vpop.eup %4140  ;;  %v3911_v23 = vpack.c.bf16 %v1514_v22, %v1513_v21  ;;  %v3263_v22 = vld [vmem:[%s4966_s4 + $0x60] sm:$0xff] }
 0x47d   :  { %v4085_v2 = vunpack.i.h.bf16 %v4083_v62  ;;  %v4084_v5 = vunpack.i.l.bf16 %v4083_v62  ;;  %v4143_v7 = vpop.eup %4142  ;;  %v918_v8 = vmul.f32 %v4141_v0, %v4127_v33  ;;  %3884 = vmatprep.subr.bf16.mxu1 %v3883_v26  ;;  %v1414_v0 = vld [vmem:[%s4969_s7 + $0x8] sm:$0xff] }
 0x47e   :  { %3868 = vmatprep.subr.bf16.mxu0 %v3867_v61  ;;  %v919_v11 = vmul.f32 %v4143_v7, %v4499_v32  ;;  %3886 = vmatpush3.bf16.msra.mxu1 %v3883_v26  ;;  %v1505_v7 = vld [vmem:[%s4971_s9] sm:$0xff]  ;;  %v1515_v26 = vld [vmem:[%s4971_s9 + $0x50] sm:$0xff] }
 0x47f   :  { %3870 = vmatpush3.bf16.msra.mxu0 %v3867_v61  ;;  %v3875_v10 = vpack.c.bf16 %v4085_v2, %v4084_v5  ;;  %v1415_v2 = vld [vmem:[%s4969_s7 + $0x10] sm:$0xff]  ;;  %v1416_v5 = vld [vmem:[%s4969_s7 + $0x18] sm:$0xff] }
 0x480   :  { %3872 = vmatprep.subr.bf16.mxu0 %v3871_v1  ;;  %v4145_v9 = vpop.eup %4144 }
 0x481   :  { %v4147_v12 = vpop.eup %4146  ;;  %v920_v14 = vmul.f32 %v4145_v9, %v4131_v37  ;;  %v1507_v9 = vld [vmem:[%s4971_s9 + $0x10] sm:$0xff] }
 0x482   :  { %3585 = vmatmul.mubr.msk.f32.vlgmr.msra.gmra.mrb[12].mxu0 %vm833_vm5, %v917_v6  ;;  %v921_v15 = vmul.f32 %v4147_v12, %v4504_v36  ;;  %v3891_v6 = vpack.c.bf16 %v1416_v5, %v1415_v2 }
 0x483   :  { %3874 = vmatpush3.bf16.msra.mxu0 %v3871_v1  ;;  %3591 = vmatprep.mubr.msk.f32.mxu0 %vm833_vm5, %v918_v8  ;;  %v3887_v1 = vpack.c.bf16 %v1414_v0, %v1413_v63  ;;  %v1506_v8 = vld [vmem:[%s4971_s9 + $0x8] sm:$0xff] }
 0x484   :  { %3876 = vmatprep.subr.bf16.mxu0 %v3875_v10  ;;  %v3260_v63 = vld [vmem:[%s4968_s6 + $0x8] ss:$0 sm:$0xff] }
 0x486   :  { %3592 = vmatmul.mubr.msk.f32.vlgmr.msra.gmra.mrb[14].mxu0 %vm833_vm5, %v919_v11  ;;  %v1508_v11 = vld [vmem:[%s4971_s9 + $0x18] sm:$0xff] }
 0x487   :  { %3878 = vmatpush3.bf16.msra.mxu0 %v3875_v10  ;;  %3598 = vmatprep.mubr.msk.f32.mxu0 %vm833_vm5, %v920_v14  ;;  %v3895_v10 = vpack.c.bf16 %v1506_v8, %v1505_v7  ;;  %v3899_v12 = vpack.c.bf16 %v1508_v11, %v1507_v9  ;;  %v1509_v14 = vld [vmem:[%s4971_s9 + $0x20] sm:$0xff] }
 0x488   :  { %3888 = vmatprep.subr.bf16.mxu0 %v3887_v1 }
 0x489   :  { %3896 = vmatprep.subr.bf16.mxu1 %v3895_v10 }
 0x48a   :  { %3599 = vmatmul.mubr.msk.f32.vlgmr.msra.gmra.mrb[16].mxu0 %vm833_vm5, %v921_v15  ;;  %v1510_v15 = vld [vmem:[%s4971_s9 + $0x28] sm:$0xff] }
 0x48b   :  { %3890 = vmatpush3.bf16.msra.mxu0 %v3887_v1 }
 0x48c   :  { %3892 = vmatprep.subr.bf16.mxu0 %v3891_v6 }
 0x48f   :  { %3894 = vmatpush3.bf16.msra.mxu0 %v3891_v6 }
 0x4d9   :  { %v3579_v17 = vpop.f32.mrb[10].mxu0 }
 0x4da   :  { %1247 = vst.msk [vmem:[#allocation2 + $0x8] sm:$0xff] %vm484_vm3, %v3579_v17  ;;  %v994_v18 = vpop.f32.mrb[11].mxu0  ;;  %v3903_v17 = vpack.c.bf16 %v1510_v15, %v1509_v14 }
 0x4db   :  { %1246 = vst.msk [vmem:[#allocation2] sm:$0xff] %vm484_vm3, %v994_v18  ;;  %v1511_v18 = vld [vmem:[%s4971_s9 + $0x30] sm:$0xff] }
 0x4dc   :  { %v3907_v20 = vpack.c.bf16 %v1512_v19, %v1511_v18 }
 0x555   :  { %v3586_v27 = vpop.f32.mrb[12].mxu0 }
 0x556   :  { %1252 = vrot.lane.b32.xlu1 %v3586_v27, %s4246_s14  ;;  %v1075_v32 = vpop.f32.mrb[13].mxu0  ;;  %v1516_v27 = vld [vmem:[%s4971_s9 + $0x58] sm:$0xff] }
 0x557   :  { %1250 = vrot.lane.b32.xlu0 %v1075_v32, %s4246_s14  ;;  %v3915_v32 = vpack.c.bf16 %v1516_v27, %v1515_v26  ;;  %v3265_v27 = vld [vmem:[%s4966_s4 + $0x70] sm:$0xff] }
 0x559   :  { %v3593_v33 = vpop.f32.mrb[14].mxu0 }
 0x55a   :  { %1263 = vrot.lane.b32.xlu1 %v3593_v33, %s4251_s29  ;;  %v1156_v34 = vpop.f32.mrb[15].mxu0  ;;  %v1517_v33 = vld [vmem:[%s4971_s9 + $0x60] sm:$0xff] }
 0x55b   :  { %1261 = vrot.lane.b32.xlu0 %v1156_v34, %s4251_s29  ;;  %v1518_v34 = vld [vmem:[%s4971_s9 + $0x68] sm:$0xff] }
 0x55d   :  { %v3600_v35 = vpop.f32.mrb[16].mxu0 }
 0x55e   :  { %1274 = vrot.lane.b32.xlu1 %v3600_v35, %s4252_s30  ;;  %v1237_v36 = vpop.f32.mrb[17].mxu0  ;;  %v3919_v35 = vpack.c.bf16 %v1518_v34, %v1517_v33  ;;  %v3269_v34 = vld [vmem:[%s4966_s4 + $0x80] sm:$0xff] }
 0x55f   :  { %1272 = vrot.lane.b32.xlu0 %v1237_v36, %s4252_s30 }
 0x5c8   :  { %v1253_v37 = vpop.permute.xlu1 %1252 }
 0x5c9   :  { %1258 = vst.msk [vmem:[#allocation2 + $0x8] sm:$0xff] %vm1256_vm6, %v1253_v37  ;;  %v1251_v38 = vpop.permute.xlu0 %1250 }
 0x5ca   :  { %1257 = vst.msk [vmem:[#allocation2] sm:$0xff] %vm1256_vm6, %v1251_v38 }
 0x5cc   :  { %v1264_v39 = vpop.permute.xlu1 %1263 }
 0x5cd   :  { %1269 = vst.msk [vmem:[#allocation2 + $0x8] sm:$0xff] %vm1267_vm7, %v1264_v39  ;;  %v1262_v41 = vpop.permute.xlu0 %1261 }
 0x5ce   :  { %1268 = vst.msk [vmem:[#allocation2] sm:$0xff] %vm1267_vm7, %v1262_v41 }
 0x5d0   :  { %v1275_v42 = vpop.permute.xlu1 %1274 }
 0x5d1   :  { %1280 = vst.msk [vmem:[#allocation2 + $0x8] sm:$0xff] %vm1278_vm8, %v1275_v42  ;;  %v1273_v43 = vpop.permute.xlu0 %1272 }
 0x5d2   :  { %1279 = vst.msk [vmem:[#allocation2] sm:$0xff] %vm1278_vm8, %v1273_v43  ;;  %v1403_v43 = vsub.s32 4, %v4405_v28 }
 0x5d8   :  { %v1282_v45 = vld [vmem:[#allocation2 + $0x8] sm:$0xff] }
 0x5d9   :  { %v1281_v44 = vld [vmem:[#allocation2] sm:$0xff] }
 0x5da   :  { %3609 = vmatprep.mubr.msk.f32.mxu1 %vm172_vm2, %v1281_v44  ;;  %v1409_v44 = vsub.s32 5, %v4405_v28 }
 0x5db   :  { %3610 = vmatmul.mubr.msk.f32.vlgmr.msra.gmra.mrb[6].mxu1 %vm172_vm2, %v1282_v45  ;;  %v1404_v45 = vrot.slane %v4412_v31, %v1403_v43 }
 0x5dc   :  { %3898 = vmatpush3.bf16.msra.mxu1 %v3895_v10 }
 0x5dd   :  { %3900 = vmatprep.subr.bf16.mxu1 %v3899_v12 }
 0x5e0   :  { %3902 = vmatpush3.bf16.msra.mxu1 %v3899_v12 }
 0x5e1   :  { %3904 = vmatprep.subr.bf16.mxu1 %v3903_v17 }
 0x5e4   :  { %3906 = vmatpush3.bf16.msra.mxu1 %v3903_v17 }
 0x5e5   :  { %3908 = vmatprep.subr.bf16.mxu1 %v3907_v20 }
 0x5e8   :  { %3910 = vmatpush3.bf16.msra.mxu1 %v3907_v20 }
 0x5e9   :  { %3912 = vmatprep.subr.bf16.mxu1 %v3911_v23 }
 0x5ec   :  { %3914 = vmatpush3.bf16.msra.mxu1 %v3911_v23  ;;  %v3264_v23 = vld [vmem:[%s4966_s4 + $0x68] sm:$0xff] }
 0x5ed   :  { %3916 = vmatprep.subr.bf16.mxu1 %v3915_v32  ;;  %v3927_v26 = vpack.c.bf16 %v3264_v23, %v3263_v22 }
 0x5ef   :  { %3928 = vmatprep.subr.bf16.mxu0 %v3927_v26 }
 0x5f0   :  { %3918 = vmatpush3.bf16.msra.mxu1 %v3915_v32  ;;  %v3266_v32 = vld [vmem:[%s4966_s4 + $0x78] sm:$0xff] }
 0x5f1   :  { %3920 = vmatprep.subr.bf16.mxu1 %v3919_v35  ;;  %v3931_v33 = vpack.c.bf16 %v3266_v32, %v3265_v27 }
 0x5f4   :  { %3922 = vmatpush3.bf16.msra.mxu1 %v3919_v35  ;;  %v3270_v35 = vld [vmem:[%s4966_s4 + $0x88] sm:$0xff] }
 0x6ae   :  { %v3611_v48 = vpop.f32.mrb[6].mxu1 }
 0x6af   :  { %v1369_v49 = vadd.f32 %v3611_v48, %v1290_v47  ;;  %v1363_v3 = vpop.f32.mrb[7].mxu1 }
 0x6b0   :  { %v1364_v4 = vadd.f32 %v1363_v3, %v1290_v47 }
 0x6b1   :  { %v1373_v50 = vadd.f32 %v1369_v49, %v4391_v25  ;;  %v1410_v49 = vrot.slane %v4412_v31, %v1409_v44 }
 0x6b2   :  { %v1372_v51 = vadd.f32 %v1364_v4, %v4389_v24 }
 0x6b3   :  { %v1377_v52 = vsel %vm172_vm2, %v1373_v50, 0.0 }
 0x6b4   :  { %1378 = vadd.xlane.f32.xlu1 %v1377_v52  ;;  %v1374_v54 = vsel %vm172_vm2, %v1372_v51, 0.0 }
 0x6b5   :  { %1375 = vadd.xlane.f32.xlu0 %v1374_v54 }
 0x741   :  { %v1379_v55 = vpop.xlane.xlu1 %1378 }
 0x742   :  { %v1382_v56 = vmul.f32 0.03125, %v1379_v55  ;;  %v1376_v57 = vpop.xlane.xlu0 %1375  ;;  %v1519_v55 = vld [vmem:[%s4971_s9 + $0x70] sm:$0xff] }
 0x743   :  { %v1381_v58 = vmul.f32 0.03125, %v1376_v57 }
 0x744   :  { %v4560_v59 = vsub.f32 %v1373_v50, %v1382_v56  ;;  %v1520_v56 = vld [vmem:[%s4971_s9 + $0x78] sm:$0xff] }
 0x745   :  { %v4562_v60 = vsub.f32 %v1372_v51, %v1381_v58  ;;  %v3923_v57 = vpack.c.bf16 %v1520_v56, %v1519_v55  ;;  %v3257_v58 = vld [vmem:[%s4970_s8] ss:$0 sm:$0xff]  ;;  %v3271_v56 = vld [vmem:[%s4966_s4 + $0x90] sm:$0xff] }
 0x746   :  { %v1386_v24 = vmul.f32 %v4560_v59, %v4560_v59 }
 0x747   :  { %v1385_v61 = vmul.f32 %v4562_v60, %v4562_v60  ;;  %3924 = vmatprep.subr.bf16.mxu1 %v3923_v57 }
 0x748   :  { %v1390_v62 = vsel %vm172_vm2, %v1386_v24, 0.0  ;;  %3926 = vmatpush3.bf16.msra.mxu1 %v3923_v57  ;;  %v3272_v57 = vld [vmem:[%s4966_s4 + $0x98] sm:$0xff] }
 0x749   :  { %v1387_v25 = vsel %vm172_vm2, %v1385_v61, 0.0 }
 0x74a   :  { %1388 = vadd.xlane.f32.xlu0 %v1387_v25 }
 0x74e   :  { %1391 = vadd.xlane.f32.xlu0 %v1390_v62 }
 0x7d7   :  { %v1389_v36 = vpop.xlane.xlu0 %1388 }
 0x7d8   :  { %v1393_v37 = vmul.f32 0.03125, %v1389_v36  ;;  %v3935_v36 = vpack.c.bf16 %v3270_v35, %v3269_v34 }
 0x7da   :  { %v1395_v38 = vadd.f32 1e-05, %v1393_v37 }
 0x7db   :  { %v1392_v39 = vpop.xlane.xlu0 %1391 }
 0x7dc   :  { %4148 = vrsqrt.f32 %v1395_v38  ;;  %v1394_v41 = vmul.f32 0.03125, %v1392_v39 }
 0x7de   :  { %v1396_v42 = vadd.f32 1e-05, %v1394_v41 }
 0x7e0   :  { %4150 = vrsqrt.f32 %v1396_v42 }
 0x7e6   :  { %v4149_v47 = vpop.eup %4148 }
 0x7e7   :  { %v1399_v48 = vmul.f32 %v4149_v47, %v4562_v60  ;;  %v1630_v47 = vsub.s32 6, %v4405_v28 }
 0x7e9   :  { %v1405_v3 = vmul.f32 %v1404_v45, %v1399_v48  ;;  %v1636_v48 = vsub.s32 7, %v4405_v28 }
 0x7ea   :  { %v4151_v4 = vpop.eup %4150 }
 0x7eb   :  { %v1400_v50 = vmul.f32 %v4151_v4, %v4560_v59  ;;  %v1411_v51 = vadd.f32 %v1410_v49, %v1405_v3 }
 0x7ed   :  { %v1406_v52 = vmul.f32 %v1404_v45, %v1400_v50  ;;  %3620 = vmatprep.mubr.msk.f32.mxu0 %vm172_vm2, %v1411_v51 }
 0x7ef   :  { %v1412_v54 = vadd.f32 %v1410_v49, %v1406_v52  ;;  %v1631_v49 = vrot.slane %v4412_v31, %v1630_v47  ;;  %v1637_v52 = vrot.slane %v4412_v31, %v1636_v48  ;;  %v3275_v31 = vld [vmem:[%s4966_s4 + $0xa0] sm:$0xff] }
 0x7f1   :  { %3621 = vmatmul.mubr.msk.f32.vlgmr.msra.gmra.mrb[18].mxu0 %vm172_vm2, %v1412_v54 }
 0x7f2   :  { %3930 = vmatpush3.bf16.msra.mxu0 %v3927_v26 }
 0x7f3   :  { %3932 = vmatprep.subr.bf16.mxu0 %v3931_v33 }
 0x7f6   :  { %3934 = vmatpush3.bf16.msra.mxu0 %v3931_v33 }
 0x7f7   :  { %3936 = vmatprep.subr.bf16.mxu0 %v3935_v36 }
 0x8c4   :  { %v3622_v59 = vpop.f32.mrb[18].mxu0 }
 0x8c5   :  { %v1500_v60 = vadd.f32 %v3622_v59, %v3257_v58  ;;  %v1494_v61 = vpop.f32.mrb[19].mxu0 }
 0x8c6   :  { %v1495_v25 = vadd.f32 %v3257_v58, %v1494_v61  ;;  %v3276_v61 = vld [vmem:[%s4966_s4 + $0xa8] sm:$0xff] }
 0x8c7   :  { %v1504_v62 = vmax.f32 %v1500_v60, 0.0  ;;  %v3939_v60 = vpack.c.bf16 %v3272_v57, %v3271_v56 }
 0x8c8   :  { %v1503_v24 = vmax.f32 %v1495_v25, 0.0  ;;  %v3943_v25 = vpack.c.bf16 %v3276_v61, %v3275_v31 }
 0x8ca   :  { %3655 = vmatprep.mubr.f32.mxu1 %v1503_v24  ;;  %v3277_v24 = vld [vmem:[%s4966_s4 + $0xb0] sm:$0xff] }
 0x8cb   :  { %3656 = vmatmul.mubr.f32.vlgmr.msra.gmra.mrb[8].mxu1 %v1504_v62  ;;  %v3278_v62 = vld [vmem:[%s4966_s4 + $0xb8] sm:$0xff] }
 0x99e   :  { %v3657_v0 = vpop.f32.mrb[8].mxu1 }
 0x99f   :  { %v1597_v1 = vadd.f32 %v3657_v0, %v3260_v63  ;;  %v1591_v2 = vpop.f32.mrb[9].mxu1  ;;  %v4715_v0 = vld [vmem:[%s4968_s6 + $0x10] sm:$0xff] }
 0x9a0   :  { %v1592_v5 = vadd.f32 %v3260_v63, %v1591_v2  ;;  %v3947_v63 = vpack.c.bf16 %v3278_v62, %v3277_v24 }
 0x9a1   :  { %v1601_v6 = vadd.f32 %v1597_v1, %v1412_v54  ;;  %v1651_v1 = vrot.slane %v4715_v0, %v170_v29  ;;  %v1825_v29 = vrot.slane %v4715_v0, %v345_v30 }
 0x9a2   :  { %v1600_v7 = vadd.f32 %v1592_v5, %v1411_v51 }
 0x9a3   :  { %v1605_v8 = vsel %vm172_vm2, %v1601_v6, 0.0 }
 0x9a4   :  { %1606 = vadd.xlane.f32.xlu0 %v1605_v8  ;;  %v1602_v9 = vsel %vm172_vm2, %v1600_v7, 0.0  ;;  %v1741_v8 = vrot.slane %v4715_v0, %v261_v40 }
 0x9a5   :  { %1603 = vadd.xlane.f32.xlu1 %v1602_v9 }
 0xa31   :  { %v1607_v10 = vpop.xlane.xlu0 %1606 }
 0xa32   :  { %v1609_v11 = vmul.f32 0.03125, %v1607_v10  ;;  %v1604_v12 = vpop.xlane.xlu1 %1603 }
 0xa33   :  { %v1608_v14 = vmul.f32 0.03125, %v1604_v12 }
 0xa34   :  { %v1611_v15 = vsub.f32 %v1601_v6, %v1609_v11 }
 0xa35   :  { %v1610_v17 = vsub.f32 %v1600_v7, %v1608_v14 }
 0xa36   :  { %v1613_v18 = vmul.f32 %v1611_v15, %v1611_v15 }
 0xa37   :  { %v1612_v19 = vmul.f32 %v1610_v17, %v1610_v17 }
 0xa38   :  { %v1617_v20 = vsel %vm172_vm2, %v1613_v18, 0.0 }
 0xa39   :  { %1618 = vadd.xlane.f32.xlu0 %v1617_v20  ;;  %v1614_v21 = vsel %vm172_vm2, %v1612_v19, 0.0 }
 0xa3a   :  { %1615 = vadd.xlane.f32.xlu1 %v1614_v21 }
 0xac6   :  { %v1619_v37 = vpop.xlane.xlu0 %1618 }
 0xac7   :  { %v1621_v38 = vmul.f32 0.03125, %v1619_v37  ;;  %v1616_v39 = vpop.xlane.xlu1 %1615 }
 0xac8   :  { %v1620_v41 = vmul.f32 0.03125, %v1616_v39 }
 0xac9   :  { %v1623_v42 = vadd.f32 1e-05, %v1621_v38 }
 0xaca   :  { %v1622_v45 = vadd.f32 1e-05, %v1620_v41 }
 0xacb   :  { %4152 = vrsqrt.f32 %v1623_v42 }
 0xacc   :  { %4154 = vrsqrt.f32 %v1622_v45 }
 0xad5   :  { %v4153_v3 = vpop.eup %4152 }
 0xad6   :  { %v4155_v4 = vpop.eup %4154  ;;  %v1627_v50 = vmul.f32 %v4153_v3, %v1611_v15 }
 0xad7   :  { %v1626_v51 = vmul.f32 %v4155_v4, %v1610_v17 }
 0xad8   :  { %v1633_v54 = vmul.f32 %v1631_v49, %v1627_v50 }
 0xad9   :  { %v1632_v55 = vmul.f32 %v1631_v49, %v1626_v51 }
 0xada   :  { %v4686_v59 = vadd.f32 %v1637_v52, %v1633_v54 }
 0xadb   :  { %v4684_v58 = vadd.f32 %v1637_v52, %v1632_v55 }
 0xadd   :  { %3666 = vmatprep.mubr.msk.f32.mxu0 %vm172_vm2, %v4684_v58 }
 0xade   :  { %3667 = vmatmul.mubr.msk.f32.vlgmr.msra.gmra.mrb[20].mxu0 %vm172_vm2, %v4686_v59 }
 0xadf   :  { %3938 = vmatpush3.bf16.msra.mxu0 %v3935_v36  ;;  %3677 = vmatprep.mubr.msk.f32.mxu0 %vm172_vm2, %v4684_v58 }
 0xae0   :  { %3940 = vmatprep.subr.bf16.mxu0 %v3939_v60 }
 0xae3   :  { %3942 = vmatpush3.bf16.msra.mxu0 %v3939_v60 }
 0xae4   :  { %3944 = vmatprep.subr.bf16.mxu0 %v3943_v25 }
 0xae6   :  { %3678 = vmatmul.mubr.msk.f32.vlgmr.msra.gmra.mrb[22].mxu0 %vm172_vm2, %v4686_v59 }
 0xae7   :  { %3946 = vmatpush3.bf16.msra.mxu0 %v3943_v25  ;;  %3688 = vmatprep.mubr.msk.f32.mxu0 %vm172_vm2, %v4684_v58 }
 0xae8   :  { %3948 = vmatprep.subr.bf16.mxu0 %v3947_v63 }
 0xaeb   :  { %3950 = vmatpush3.bf16.msra.mxu0 %v3947_v63 }
 0xaee   :  { %3689 = vmatmul.mubr.msk.f32.vlgmr.msra.gmra.mrb[24].mxu0 %vm172_vm2, %v4686_v59 }
 0xbb1   :  { %v3668_v2 = vpop.f32.mrb[20].mxu0 }
 0xbb2   :  { %v1730_v5 = vadd.f32 %v3668_v2, %v1651_v1  ;;  %v1724_v6 = vpop.f32.mrb[21].mxu0 }
 0xbb3   :  { %v1725_v7 = vadd.f32 %v1724_v6, %v1651_v1 }
 0xbb4   :  { %1902 = vst.msk [vmem:[#allocation2 + $0x8] sm:$0xff] %vm172_vm2, %v1730_v5 }
 0xbb5   :  { %1901 = vst.msk [vmem:[#allocation2] sm:$0xff] %vm172_vm2, %v1725_v7 }
 0xbb9   :  { %v3679_v9 = vpop.f32.mrb[22].mxu0 }
 0xbba   :  { %v1814_v10 = vadd.f32 %v3679_v9, %v1741_v8  ;;  %v1808_v11 = vpop.f32.mrb[23].mxu0 }
 0xbbb   :  { %v1809_v12 = vadd.f32 %v1808_v11, %v1741_v8  ;;  %v1908_v30 = vld [vmem:[#allocation2 + $0x8] sm:$0xff] }
 0xbbc   :  { %1904 = vst.msk [vmem:[#allocation2 + $0x18] sm:$0xff] %vm172_vm2, %v1814_v10  ;;  %v1907_v14 = vld [vmem:[#allocation2] sm:$0xff] }
 0xbbd   :  { %1903 = vst.msk [vmem:[#allocation2 + $0x10] sm:$0xff] %vm172_vm2, %v1809_v12  ;;  %3695 = vmatprep.mubr.msk.f32.mxu0 %vm484_vm3, %v1907_v14 }
 0xbc1   :  { %v3690_v15 = vpop.f32.mrb[24].mxu0 }
 0xbc2   :  { %v1898_v17 = vadd.f32 %v3690_v15, %v1825_v29  ;;  %v1892_v18 = vpop.f32.mrb[25].mxu0 }
 0xbc3   :  { %v1893_v19 = vadd.f32 %v1892_v18, %v1825_v29  ;;  %v1924_v40 = vld [vmem:[#allocation2 + $0x18] sm:$0xff] }
 0xbc4   :  { %1906 = vst.msk [vmem:[#allocation2 + $0x28] sm:$0xff] %vm172_vm2, %v1898_v17  ;;  %v1923_v20 = vld [vmem:[#allocation2 + $0x10] sm:$0xff] }
 0xbc5   :  { %1905 = vst.msk [vmem:[#allocation2 + $0x20] sm:$0xff] %vm172_vm2, %v1893_v19  ;;  %v4091_v21 = vpack.i.bf16 %v1924_v40, %v1923_v20  ;;  %v3951_v22 = vpack.c.bf16 %v1924_v40, %v1923_v20 }
 0xbc7   :  { %4092 = vrot.lane.b32.xlu0 %v4091_v21, %s4250_s23  ;;  %4087 = vrot.lane.b32.xlu1 %v4091_v21, %s4249_s21 }
 0xbc8   :  { %3953 = vmatprep.subr.msk.bf16.mxu0 %vm4433_vm4, %v3951_v22 }
 0xbc9   :  { %3956 = vmatpush3.bf16.xpose.msk.msra.mxu0 %vm4433_vm4, %v3951_v22 }
 0xbcb   :  { %1913 = vrot.lane.b32.xlu0 %v1908_v30, %s4249_s21  ;;  %4097 = vrot.lane.b32.xlu1 %v4091_v21, %s4248_s3  ;;  %v1940_v23 = vld [vmem:[#allocation2 + $0x28] sm:$0xff] }
 0xbcc   :  { %v1939_v26 = vld [vmem:[#allocation2 + $0x20] sm:$0xff] }
 0xbcd   :  { %v4741_v27 = vpack.i.bf16 %v1940_v23, %v1939_v26  ;;  %v3975_v49 = vpack.c.bf16 %v1940_v23, %v1939_v26 }
 0xbcf   :  { %1917 = vrot.lane.b32.xlu0 %v1908_v30, %s4250_s23  ;;  %1911 = vrot.lane.b32.xlu1 %v1907_v14, %s4249_s21 }
 0xbd0   :  { %3696 = vmatmul.mubr.msk.f32.vlgmr.msra.gmra.mrb[26].mxu0 %vm484_vm3, %v1908_v30 }
 0xbd3   :  { %1921 = vrot.lane.b32.xlu0 %v1908_v30, %s4248_s3  ;;  %1915 = vrot.lane.b32.xlu1 %v1907_v14, %s4250_s23 }
 0xbd7   :  { %1919 = vrot.lane.b32.xlu1 %v1907_v14, %s4248_s3 }
 0xc39   :  { %v4093_v32 = vpop.permute.xlu0 %4092  ;;  %v4088_v33 = vpop.permute.xlu1 %4087 }
 0xc3a   :  { %v4095_v34 = vunpack.i.h.bf16 %v4093_v32  ;;  %v4094_v35 = vunpack.i.l.bf16 %v4093_v32  ;;  %v4090_v36 = vunpack.i.h.bf16 %v4088_v33  ;;  %v4089_v37 = vunpack.i.l.bf16 %v4088_v33 }
 0xc3c   :  { %v3963_v38 = vpack.c.bf16 %v4095_v34, %v4094_v35  ;;  %v3957_v39 = vpack.c.bf16 %v4090_v36, %v4089_v37 }
 0xc3d   :  { %v4098_v41 = vpop.permute.xlu1 %4097  ;;  %v1914_v3 = vpop.permute.xlu0 %1913 }
 0xc3e   :  { %v4100_v42 = vunpack.i.h.bf16 %v4098_v41  ;;  %v4099_v45 = vunpack.i.l.bf16 %v4098_v41  ;;  %3959 = vmatprep.subr.msk.bf16.mxu1 %vm4433_vm4, %v3957_v39  ;;  %3965 = vmatprep.subr.msk.bf16.mxu0 %vm4433_vm4, %v3963_v38 }
 0xc3f   :  { %3962 = vmatpush3.bf16.xpose.msk.msra.mxu1 %vm4433_vm4, %v3957_v39  ;;  %3968 = vmatpush3.bf16.xpose.msk.msra.mxu0 %vm4433_vm4, %v3963_v38 }
 0xc40   :  { %v3969_v4 = vpack.c.bf16 %v4100_v42, %v4099_v45  ;;  %3976 = vmatprep.subr.bf16.mxu0 %v3975_v49 }
 0xc41   :  { %v1912_v50 = vpop.permute.xlu1 %1911  ;;  %v1918_v52 = vpop.permute.xlu0 %1917 }
 0xc42   :  { %3702 = vmatprep.mubr.msk.f32.mxu1 %vm484_vm3, %v1912_v50  ;;  %3971 = vmatprep.subr.msk.bf16.mxu1 %vm4433_vm4, %v3969_v4 }
 0xc45   :  { %v1916_v51 = vpop.permute.xlu1 %1915  ;;  %v1922_v55 = vpop.permute.xlu0 %1921 }
 0xc46   :  { %3703 = vmatmul.mubr.msk.f32.vlgmr.msra.gmra.mrb[10].mxu1 %vm484_vm3, %v1914_v3  ;;  %3709 = vmatprep.mubr.msk.f32.mxu0 %vm484_vm3, %v1916_v51 }
 0xc47   :  { %3710 = vmatmul.mubr.msk.f32.vlgmr.msra.gmra.mrb[28].mxu0 %vm484_vm3, %v1918_v52  ;;  %3974 = vmatpush3.bf16.xpose.msk.msra.mxu1 %vm4433_vm4, %v3969_v4 }
 0xc48   :  { %3978 = vmatpush3.bf16.msra.mxu0 %v3975_v49 }
 0xc49   :  { %v1920_v54 = vpop.permute.xlu1 %1919 }
 0xc4a   :  { %3716 = vmatprep.mubr.msk.f32.mxu1 %vm484_vm3, %v1920_v54 }
 0xc4e   :  { %3717 = vmatmul.mubr.msk.f32.vlgmr.msra.gmra.mrb[12].mxu1 %vm484_vm3, %v1922_v55 }
 0xca3   :  { %v3697_v56 = vpop.f32.mrb[26].mxu0 }
 0xca4   :  { %v2294_v57 = vmul.f32 0.35355338, %v3697_v56  ;;  %v2035_v60 = vpop.f32.mrb[27].mxu0 }
 0xca5   :  { %v2293_v31 = vmul.f32 0.35355338, %v2035_v60 }
 0xca6   :  { %v2302_v61 = vadd.f32 %v2294_v57, %v4475_v13 }
 0xca7   :  { %v2301_v25 = vadd.f32 %v2293_v31, %v4477_v16 }
 0xca8   :  { %v2312_v24 = vsel %vm833_vm5, %v2302_v61, -inf }
 0xca9   :  { %2313 = vmax.xlane.f32.xlu0 %v2312_v24  ;;  %v2309_v53 = vsel %vm833_vm5, %v2301_v25, -inf }
 0xcaa   :  { %2310 = vmax.xlane.f32.xlu1 %v2309_v53 }
 0xd19   :  { %v3704_v62 = vpop.f32.mrb[10].mxu1 }
 0xd1a   :  { %v2296_v63 = vmul.f32 0.35355338, %v3704_v62  ;;  %v2118_v1 = vpop.f32.mrb[11].mxu1  ;;  %v3711_v2 = vpop.f32.mrb[28].mxu0 }
 0xd1b   :  { %v2295_v5 = vmul.f32 0.35355338, %v2118_v1  ;;  %v2298_v6 = vmul.f32 0.35355338, %v3711_v2  ;;  %v2201_v7 = vpop.f32.mrb[29].mxu0 }
 0xd1c   :  { %v2297_v8 = vmul.f32 0.35355338, %v2201_v7  ;;  %v2304_v9 = vadd.f32 %v2296_v63, %v4475_v13 }
 0xd1d   :  { %v2303_v10 = vadd.f32 %v2295_v5, %v4477_v16  ;;  %v2306_v12 = vadd.f32 %v2298_v6, %v4475_v13 }
 0xd1e   :  { %v2318_v11 = vsel %vm833_vm5, %v2304_v9, -inf  ;;  %v2305_v29 = vadd.f32 %v2297_v8, %v4477_v16 }
 0xd1f   :  { %2319 = vmax.xlane.f32.xlu1 %v2318_v11  ;;  %v2315_v14 = vsel %vm833_vm5, %v2303_v10, -inf  ;;  %v2324_v19 = vsel %vm833_vm5, %v2306_v12, -inf }
 0xd20   :  { %2316 = vmax.xlane.f32.xlu0 %v2315_v14  ;;  %v2321_v20 = vsel %vm833_vm5, %v2305_v29, -inf }
 0xd21   :  { %v3718_v15 = vpop.f32.mrb[12].mxu1 }
 0xd22   :  { %v2300_v17 = vmul.f32 0.35355338, %v3718_v15  ;;  %v2284_v18 = vpop.f32.mrb[13].mxu1 }
 0xd23   :  { %v2299_v40 = vmul.f32 0.35355338, %v2284_v18  ;;  %2325 = vmax.xlane.f32.xlu1 %v2324_v19 }
 0xd24   :  { %2322 = vmax.xlane.f32.xlu0 %v2321_v20  ;;  %v2308_v21 = vadd.f32 %v2300_v17, %v4475_v13 }
 0xd25   :  { %v2307_v22 = vadd.f32 %v2299_v40, %v4477_v16 }
 0xd26   :  { %v2330_v30 = vsel %vm833_vm5, %v2308_v21, -inf }
 0xd27   :  { %2331 = vmax.xlane.f32.xlu1 %v2330_v30  ;;  %v2327_v23 = vsel %vm833_vm5, %v2307_v22, -inf }
 0xd28   :  { %2328 = vmax.xlane.f32.xlu0 %v2327_v23 }
 0xd36   :  { %v2314_v26 = vpop.xlane.xlu0 %2313 }
 0xd37   :  { %v2334_v32 = vsub.f32 %v2302_v61, %v2314_v26  ;;  %v2311_v33 = vpop.xlane.xlu1 %2310 }
 0xd38   :  { %v2333_v34 = vsub.f32 %v2301_v25, %v2311_v33 }
 0xd39   :  { %v2343_v35 = vmul.f32 1.442695, %v2334_v32 }
 0xd3a   :  { %v2341_v36 = vmul.f32 1.442695, %v2333_v34 }
 0xd3b   :  { %4156 = vpow2.f32 %v2343_v35 }
 0xd3c   :  { %4158 = vpow2.f32 %v2341_v36 }
 0xd45   :  { %v4157_v37 = vpop.eup %4156 }
 0xd46   :  { %v4159_v38 = vpop.eup %4158  ;;  %v2360_v13 = vsel %vm833_vm5, %v4157_v37, 0.0 }
 0xd47   :  { %2361 = vadd.xlane.f32.xlu1 %v2360_v13  ;;  %v2357_v16 = vsel %vm833_vm5, %v4159_v38, 0.0 }
 0xd48   :  { %2358 = vadd.xlane.f32.xlu0 %v2357_v16 }
 0xdac   :  { %v2320_v39 = vpop.xlane.xlu1 %2319 }
 0xdad   :  { %v2336_v41 = vsub.f32 %v2304_v9, %v2320_v39  ;;  %v2317_v42 = vpop.xlane.xlu0 %2316 }
 0xdae   :  { %v2335_v45 = vsub.f32 %v2303_v10, %v2317_v42 }
 0xdaf   :  { %v2347_v49 = vmul.f32 1.442695, %v2336_v41 }
 0xdb0   :  { %v2345_v3 = vmul.f32 1.442695, %v2335_v45  ;;  %v2326_v4 = vpop.xlane.xlu1 %2325 }
 0xdb1   :  { %4160 = vpow2.f32 %v2347_v49  ;;  %v2338_v50 = vsub.f32 %v2306_v12, %v2326_v4  ;;  %v2323_v51 = vpop.xlane.xlu0 %2322 }
 0xdb2   :  { %4162 = vpow2.f32 %v2345_v3  ;;  %v2337_v52 = vsub.f32 %v2305_v29, %v2323_v51 }
 0xdb3   :  { %v2351_v54 = vmul.f32 1.442695, %v2338_v50 }
 0xdb4   :  { %v2349_v55 = vmul.f32 1.442695, %v2337_v52  ;;  %v2332_v56 = vpop.xlane.xlu1 %2331 }
 0xdb5   :  { %4164 = vpow2.f32 %v2351_v54  ;;  %v2340_v57 = vsub.f32 %v2308_v21, %v2332_v56  ;;  %v2329_v60 = vpop.xlane.xlu0 %2328 }
 0xdb6   :  { %4166 = vpow2.f32 %v2349_v55  ;;  %v2339_v31 = vsub.f32 %v2307_v22, %v2329_v60  ;;  %v3306_v60 = vld [vmem:[%s4967_s5 + $0x28] sm:$0xff] }
 0xdb7   :  { %v2355_v61 = vmul.f32 1.442695, %v2340_v57  ;;  %v3305_v57 = vld [vmem:[%s4967_s5 + $0x20] sm:$0xff] }
 0xdb8   :  { %v2353_v25 = vmul.f32 1.442695, %v2339_v31  ;;  %v3991_v31 = vpack.c.bf16 %v3306_v60, %v3305_v57  ;;  %v3327_v57 = vld [vmem:[%s4971_s9 + $0xc8] sm:$0xff] }
 0xdb9   :  { %4168 = vpow2.f32 %v2355_v61  ;;  %v3307_v61 = vld [vmem:[%s4967_s5 + $0x30] sm:$0xff] }
 0xdba   :  { %4170 = vpow2.f32 %v2353_v25  ;;  %v3308_v25 = vld [vmem:[%s4967_s5 + $0x38] sm:$0xff] }
 0xdbb   :  { %v4785_v24 = vpop.eup %4160 }
 0xdbc   :  { %v4163_v53 = vpop.eup %4162  ;;  %v2366_v62 = vsel %vm833_vm5, %v4785_v24, 0.0 }
 0xdbd   :  { %2367 = vadd.xlane.f32.xlu1 %v2366_v62  ;;  %v2363_v63 = vsel %vm833_vm5, %v4163_v53, 0.0 }
 0xdbe   :  { %2364 = vadd.xlane.f32.xlu0 %v2363_v63 }
 0xdbf   :  { %v4165_v1 = vpop.eup %4164 }
 0xdc0   :  { %v4167_v2 = vpop.eup %4166  ;;  %v2372_v5 = vsel %vm833_vm5, %v4165_v1, 0.0 }
 0xdc1   :  { %2373 = vadd.xlane.f32.xlu1 %v2372_v5  ;;  %v2369_v6 = vsel %vm833_vm5, %v4167_v2, 0.0 }
 0xdc2   :  { %2370 = vadd.xlane.f32.xlu0 %v2369_v6 }
 0xdc3   :  { %v4792_v7 = vpop.eup %4168 }
 0xdc4   :  { %v4171_v8 = vpop.eup %4170  ;;  %v2378_v9 = vsel %vm833_vm5, %v4792_v7, 0.0 }
 0xdc5   :  { %2379 = vadd.xlane.f32.xlu1 %v2378_v9  ;;  %v2375_v10 = vsel %vm833_vm5, %v4171_v8, 0.0 }
 0xdc6   :  { %2376 = vadd.xlane.f32.xlu0 %v2375_v10 }
 0xdd4   :  { %v2362_v11 = vpop.xlane.xlu1 %2361 }
 0xdd5   :  { %4172 = vrcp.f32 %v2362_v11  ;;  %v2359_v12 = vpop.xlane.xlu0 %2358 }
 0xdd6   :  { %4174 = vrcp.f32 %v2359_v12  ;;  %4107 = vrot.lane.b32.xlu1 %v4741_v27, %s4250_s23 }
 0xdda   :  { %4112 = vrot.lane.b32.xlu1 %v4741_v27, %s4248_s3 }
 0xddc   :  { %4102 = vrot.lane.b32.xlu0 %v4741_v27, %s4249_s21 }
 0xddf   :  { %v4173_v14 = vpop.eup %4172 }
 0xde0   :  { %v4175_v29 = vpop.eup %4174  ;;  %v2390_v17 = vmul.f32 %v4173_v14, %v4157_v37 }
 0xde1   :  { %v2389_v15 = vmul.f32 %v4175_v29, %v4159_v38  ;;  %v2763_v29 = vrot.slane %v4715_v0, %v1289_v46 }
 0xde3   :  { %3723 = vmatprep.mubr.msk.f32.mxu0 %vm833_vm5, %v2389_v15 }
 0xde4   :  { %3724 = vmatmul.mubr.msk.f32.vlgmr.msra.gmra.mrb[30].mxu0 %vm833_vm5, %v2390_v17 }
 0xe4a   :  { %v2368_v18 = vpop.xlane.xlu1 %2367 }
 0xe4b   :  { %v2365_v19 = vpop.xlane.xlu0 %2364 }
 0xe4c   :  { %4176 = vrcp.f32 %v2365_v19 }
 0xe4e   :  { %v2374_v40 = vpop.xlane.xlu1 %2373 }
 0xe4f   :  { %4178 = vrcp.f32 %v2374_v40  ;;  %v2371_v20 = vpop.xlane.xlu0 %2370 }
 0xe50   :  { %4180 = vrcp.f32 %v2371_v20 }
 0xe51   :  { %4182 = vrcp.f32 %v2368_v18 }
 0xe52   :  { %v2380_v21 = vpop.xlane.xlu1 %2379 }
 0xe53   :  { %v2377_v22 = vpop.xlane.xlu0 %2376 }
 0xe54   :  { %4184 = vrcp.f32 %v2377_v22 }
 0xe55   :  { %4186 = vrcp.f32 %v2380_v21 }
 0xe56   :  { %v4177_v27 = vpop.eup %4176  ;;  %v4108_v30 = vpop.permute.xlu1 %4107 }
 0xe57   :  { %v4110_v23 = vunpack.i.h.bf16 %v4108_v30  ;;  %v4109_v26 = vunpack.i.l.bf16 %v4108_v30  ;;  %v4103_v32 = vpop.permute.xlu0 %4102  ;;  %v2391_v33 = vmul.f32 %v4177_v27, %v4163_v53 }
 0xe58   :  { %v4105_v34 = vunpack.i.h.bf16 %v4103_v32  ;;  %v4104_v35 = vunpack.i.l.bf16 %v4103_v32 }
 0xe59   :  { %v4179_v36 = vpop.eup %4178  ;;  %v3983_v37 = vpack.c.bf16 %v4110_v23, %v4109_v26  ;;  %3730 = vmatprep.mubr.msk.f32.mxu0 %vm833_vm5, %v2391_v33 }
 0xe5a   :  { %v4181_v38 = vpop.eup %4180  ;;  %v3979_v13 = vpack.c.bf16 %v4105_v34, %v4104_v35  ;;  %v4113_v16 = vpop.permute.xlu1 %4112  ;;  %v2394_v49 = vmul.f32 %v4179_v36, %v4165_v1  ;;  %v3311_v35 = vld [vmem:[%s4969_s7 + $0x20] sm:$0xff]  ;;  %v3312_v36 = vld [vmem:[%s4969_s7 + $0x28] sm:$0xff] }
 0xe5b   :  { %v4183_v39 = vpop.eup %4182  ;;  %v4115_v41 = vunpack.i.h.bf16 %v4113_v16  ;;  %v4114_v42 = vunpack.i.l.bf16 %v4113_v16  ;;  %3984 = vmatprep.subr.bf16.mxu1 %v3983_v37  ;;  %v2393_v45 = vmul.f32 %v4181_v38, %v4167_v2  ;;  %v3313_v38 = vld [vmem:[%s4969_s7 + $0x30] sm:$0xff] }
 0xe5c   :  { %3980 = vmatprep.subr.bf16.mxu0 %v3979_v13  ;;  %3986 = vmatpush3.bf16.msra.mxu1 %v3983_v37  ;;  %v2392_v50 = vmul.f32 %v4183_v39, %v4785_v24  ;;  %v3995_v24 = vpack.c.bf16 %v3308_v25, %v3307_v61  ;;  %v3999_v37 = vpack.c.bf16 %v3312_v36, %v3311_v35  ;;  %v3318_v39 = vld [vmem:[%s4971_s9 + $0x80] sm:$0xff]  ;;  %v3329_v61 = vld [vmem:[%s4971_s9 + $0xd8] sm:$0xff] }
 0xe5d   :  { %v3987_v3 = vpack.c.bf16 %v4115_v41, %v4114_v42  ;;  %3982 = vmatpush3.bf16.msra.mxu0 %v3979_v13  ;;  %3737 = vmatprep.mubr.msk.f32.mxu1 %vm833_vm5, %v2393_v45  ;;  %v3314_v13 = vld [vmem:[%s4969_s7 + $0x38] sm:$0xff]  ;;  %v3319_v41 = vld [vmem:[%s4971_s9 + $0x88] sm:$0xff]  ;;  %v3320_v42 = vld [vmem:[%s4971_s9 + $0x90] sm:$0xff] }
 0xe5e   :  { %v4185_v4 = vpop.eup %4184  ;;  %3992 = vmatprep.subr.bf16.mxu1 %v3991_v31  ;;  %v4003_v16 = vpack.c.bf16 %v3314_v13, %v3313_v38  ;;  %v4007_v45 = vpack.c.bf16 %v3319_v41, %v3318_v39 }
 0xe5f   :  { %v4187_v51 = vpop.eup %4186  ;;  %3738 = vmatmul.mubr.msk.f32.vlgmr.msra.gmra.mrb[14].mxu1 %vm833_vm5, %v2394_v49  ;;  %3988 = vmatprep.subr.bf16.mxu0 %v3987_v3  ;;  %v2395_v52 = vmul.f32 %v4185_v4, %v4171_v8  ;;  %v3321_v49 = vld [vmem:[%s4971_s9 + $0x98] sm:$0xff]  ;;  %v3322_v4 = vld [vmem:[%s4971_s9 + $0xa0] sm:$0xff] }
 0xe60   :  { %3731 = vmatmul.mubr.msk.f32.vlgmr.msra.gmra.mrb[32].mxu0 %vm833_vm5, %v2392_v50  ;;  %v2396_v54 = vmul.f32 %v4187_v51, %v4792_v7  ;;  %3994 = vmatpush3.bf16.msra.mxu1 %v3991_v31  ;;  %v3323_v50 = vld [vmem:[%s4971_s9 + $0xa8] sm:$0xff]  ;;  %v3328_v31 = vld [vmem:[%s4971_s9 + $0xd0] sm:$0xff] }
 0xe61   :  { %3990 = vmatpush3.bf16.msra.mxu0 %v3987_v3  ;;  %3744 = vmatprep.mubr.msk.f32.mxu0 %vm833_vm5, %v2395_v52  ;;  %v4011_v3 = vpack.c.bf16 %v3321_v49, %v3320_v42  ;;  %v4015_v51 = vpack.c.bf16 %v3323_v50, %v3322_v4  ;;  %v3324_v52 = vld [vmem:[%s4971_s9 + $0xb0] sm:$0xff]  ;;  %v4027_v25 = vpack.c.bf16 %v3329_v61, %v3328_v31  ;;  %v3114_v4 = vld [vmem:[%s4972_s10] sm:$0xff]  ;;  %v3115_v50 = vld [vmem:[%s4972_s10 + $0x8] sm:$0xff] }
 0xe62   :  { %3996 = vmatprep.subr.bf16.mxu1 %v3995_v24  ;;  %4000 = vmatprep.subr.bf16.mxu0 %v3999_v37 }
 0xe64   :  { %3745 = vmatmul.mubr.msk.f32.vlgmr.msra.gmra.mrb[34].mxu0 %vm833_vm5, %v2396_v54  ;;  %3998 = vmatpush3.bf16.msra.mxu1 %v3995_v24  ;;  %v3325_v54 = vld [vmem:[%s4971_s9 + $0xb8] sm:$0xff]  ;;  %v3330_v24 = vld [vmem:[%s4971_s9 + $0xe0] sm:$0xff] }
 0xe65   :  { %4002 = vmatpush3.bf16.msra.mxu0 %v3999_v37  ;;  %4008 = vmatprep.subr.bf16.mxu1 %v4007_v45 }
 0xe66   :  { %4004 = vmatprep.subr.bf16.mxu0 %v4003_v16 }
 0xe69   :  { %4006 = vmatpush3.bf16.msra.mxu0 %v4003_v16 }
 0xeb7   :  { %v3725_v55 = vpop.f32.mrb[30].mxu0 }
 0xeb8   :  { %2722 = vst.msk [vmem:[#allocation2 + $0x8] sm:$0xff] %vm484_vm3, %v3725_v55  ;;  %v2469_v56 = vpop.f32.mrb[31].mxu0  ;;  %v4019_v55 = vpack.c.bf16 %v3325_v54, %v3324_v52  ;;  %v3116_v52 = vld [vmem:[%s4972_s10 + $0x10] sm:$0xff]  ;;  %v3117_v54 = vld [vmem:[%s4972_s10 + $0x18] sm:$0xff] }
 0xeb9   :  { %2721 = vst.msk [vmem:[#allocation2] sm:$0xff] %vm484_vm3, %v2469_v56  ;;  %v3326_v56 = vld [vmem:[%s4971_s9 + $0xc0] sm:$0xff] }
 0xeba   :  { %v4023_v60 = vpack.c.bf16 %v3327_v57, %v3326_v56 }
 0xf32   :  { %v3739_v53 = vpop.f32.mrb[14].mxu1 }
 0xf33   :  { %v3732_v62 = vpop.f32.mrb[32].mxu0  ;;  %v2631_v63 = vpop.f32.mrb[15].mxu1 }
 0xf34   :  { %2727 = vrot.lane.b32.xlu1 %v3732_v62, %s4246_s14  ;;  %v2550_v1 = vpop.f32.mrb[33].mxu0 }
 0xf35   :  { %2725 = vrot.lane.b32.xlu0 %v2550_v1, %s4246_s14 }
 0xf37   :  { %v3746_v2 = vpop.f32.mrb[34].mxu0 }
 0xf38   :  { %2737 = vrot.lane.b32.xlu1 %v3739_v53, %s4251_s29  ;;  %v2712_v5 = vpop.f32.mrb[35].mxu0  ;;  %v3331_v53 = vld [vmem:[%s4971_s9 + $0xe8] sm:$0xff] }
 0xf39   :  { %2735 = vrot.lane.b32.xlu0 %v2631_v63, %s4251_s29  ;;  %v4031_v62 = vpack.c.bf16 %v3331_v53, %v3330_v24  ;;  %v3105_v24 = vrot.slane %v4715_v0, %v1630_v47  ;;  %v3335_v47 = vld [vmem:[%s4973_s11] ss:$0 sm:$0xff] }
 0xf3c   :  { %2747 = vrot.lane.b32.xlu1 %v3746_v2, %s4252_s30 }
 0xf3d   :  { %2745 = vrot.lane.b32.xlu0 %v2712_v5, %s4252_s30 }
 0xfa6   :  { %v2728_v6 = vpop.permute.xlu1 %2727 }
 0xfa7   :  { %2732 = vst.msk [vmem:[#allocation2 + $0x8] sm:$0xff] %vm1256_vm6, %v2728_v6  ;;  %v2726_v7 = vpop.permute.xlu0 %2725 }
 0xfa8   :  { %2731 = vst.msk [vmem:[#allocation2] sm:$0xff] %vm1256_vm6, %v2726_v7 }
 0xfaa   :  { %v2738_v8 = vpop.permute.xlu1 %2737 }
 0xfab   :  { %2742 = vst.msk [vmem:[#allocation2 + $0x8] sm:$0xff] %vm1267_vm7, %v2738_v8  ;;  %v2736_v9 = vpop.permute.xlu0 %2735  ;;  %v2876_v8 = vrot.slane %v4715_v0, %v1403_v43  ;;  %v3332_v43 = vld [vmem:[%s4971_s9 + $0xf0] sm:$0xff] }
 0xfac   :  { %2741 = vst.msk [vmem:[#allocation2] sm:$0xff] %vm1267_vm7, %v2736_v9 }
 0xfae   :  { %v2748_v10 = vpop.permute.xlu1 %2747 }
 0xfaf   :  { %2752 = vst.msk [vmem:[#allocation2 + $0x8] sm:$0xff] %vm1278_vm8, %v2748_v10  ;;  %v2746_v11 = vpop.permute.xlu0 %2745 }
 0xfb0   :  { %2751 = vst.msk [vmem:[#allocation2] sm:$0xff] %vm1278_vm8, %v2746_v11  ;;  %v2882_v11 = vrot.slane %v4715_v0, %v1409_v44 }
 0xfb6   :  { %v2754_v14 = vld [vmem:[#allocation2 + $0x8] sm:$0xff] }
 0xfb7   :  { %v2753_v12 = vld [vmem:[#allocation2] sm:$0xff] }
 0xfb8   :  { %3755 = vmatprep.mubr.msk.f32.mxu1 %vm172_vm2, %v2753_v12 }
 0xfb9   :  { %3756 = vmatmul.mubr.msk.f32.vlgmr.msra.gmra.mrb[16].mxu1 %vm172_vm2, %v2754_v14 }
 0xfba   :  { %4010 = vmatpush3.bf16.msra.mxu1 %v4007_v45 }
 0xfbb   :  { %4012 = vmatprep.subr.bf16.mxu1 %v4011_v3 }
 0xfbe   :  { %4014 = vmatpush3.bf16.msra.mxu1 %v4011_v3 }
 0xfbf   :  { %4016 = vmatprep.subr.bf16.mxu1 %v4015_v51 }
 0xfc2   :  { %4018 = vmatpush3.bf16.msra.mxu1 %v4015_v51  ;;  %v4039_v51 = vpack.c.bf16 %v3115_v50, %v3114_v4 }
 0xfc3   :  { %4020 = vmatprep.subr.bf16.mxu1 %v4019_v55 }
 0xfc4   :  { %4040 = vmatprep.subr.bf16.mxu0 %v4039_v51 }
 0xfc6   :  { %4022 = vmatpush3.bf16.msra.mxu1 %v4019_v55  ;;  %v4043_v55 = vpack.c.bf16 %v3117_v54, %v3116_v52 }
 0xfc7   :  { %4024 = vmatprep.subr.bf16.mxu1 %v4023_v60 }
 0xfca   :  { %4026 = vmatpush3.bf16.msra.mxu1 %v4023_v60 }
 0xfcb   :  { %4028 = vmatprep.subr.bf16.mxu1 %v4027_v25 }
 0xfce   :  { %4030 = vmatpush3.bf16.msra.mxu1 %v4027_v25 }
 0xfcf   :  { %4032 = vmatprep.subr.bf16.mxu1 %v4031_v62 }
 0xfd2   :  { %4034 = vmatpush3.bf16.msra.mxu1 %v4031_v62 }
0x108c   :  { %v3757_v15 = vpop.f32.mrb[16].mxu1 }
0x108d   :  { %v2842_v17 = vadd.f32 %v3757_v15, %v2763_v29  ;;  %v2836_v18 = vpop.f32.mrb[17].mxu1 }
0x108e   :  { %v2837_v19 = vadd.f32 %v2836_v18, %v2763_v29 }
0x108f   :  { %v2846_v40 = vadd.f32 %v2842_v17, %v4686_v59 }
0x1090   :  { %v2845_v20 = vadd.f32 %v2837_v19, %v4684_v58  ;;  %v3333_v19 = vld [vmem:[%s4971_s9 + $0xf8] sm:$0xff] }
0x1091   :  { %v2850_v21 = vsel %vm172_vm2, %v2846_v40, 0.0  ;;  %v4035_v44 = vpack.c.bf16 %v3333_v19, %v3332_v43 }
0x1092   :  { %2851 = vadd.xlane.f32.xlu1 %v2850_v21  ;;  %v2847_v22 = vsel %vm172_vm2, %v2845_v20, 0.0 }
0x1093   :  { %2848 = vadd.xlane.f32.xlu0 %v2847_v22  ;;  %4036 = vmatprep.subr.bf16.mxu1 %v4035_v44 }
0x1094   :  { %4038 = vmatpush3.bf16.msra.mxu1 %v4035_v44 }
0x111f   :  { %v2852_v27 = vpop.xlane.xlu1 %2851 }
0x1120   :  { %v2854_v30 = vmul.f32 0.03125, %v2852_v27  ;;  %v2849_v23 = vpop.xlane.xlu0 %2848 }
0x1121   :  { %v2853_v26 = vmul.f32 0.03125, %v2849_v23 }
0x1122   :  { %v4848_v32 = vsub.f32 %v2846_v40, %v2854_v30  ;;  %v3315_v40 = vld [vmem:[%s4970_s8 + $0x1] ss:$0 sm:$0xff] }
0x1123   :  { %v2855_v46 = vsub.f32 %v2845_v20, %v2853_v26  ;;  %v3334_v26 = vld [vmem:[%s4968_s6 + $0x18] ss:$0 sm:$0xff] }
0x1124   :  { %v2858_v59 = vmul.f32 %v4848_v32, %v4848_v32 }
0x1125   :  { %v2857_v33 = vmul.f32 %v2855_v46, %v2855_v46 }
0x1126   :  { %v2862_v58 = vsel %vm172_vm2, %v2858_v59, 0.0 }
0x1127   :  { %v2859_v34 = vsel %vm172_vm2, %v2857_v33, 0.0 }
0x1128   :  { %2860 = vadd.xlane.f32.xlu0 %v2859_v34 }
0x112c   :  { %2863 = vadd.xlane.f32.xlu0 %v2862_v58 }
0x11b5   :  { %v2861_v63 = vpop.xlane.xlu0 %2860 }
0x11b6   :  { %v2865_v1 = vmul.f32 0.03125, %v2861_v63 }
0x11b8   :  { %v2867_v2 = vadd.f32 1e-05, %v2865_v1 }
0x11b9   :  { %v2864_v5 = vpop.xlane.xlu0 %2863 }
0x11ba   :  { %4188 = vrsqrt.f32 %v2867_v2  ;;  %v2866_v6 = vmul.f32 0.03125, %v2864_v5  ;;  %v3111_v2 = vrot.slane %v4715_v0, %v1636_v48 }
0x11bc   :  { %v2868_v7 = vadd.f32 1e-05, %v2866_v6 }
0x11be   :  { %4190 = vrsqrt.f32 %v2868_v7 }
0x11c4   :  { %v4189_v9 = vpop.eup %4188 }
0x11c5   :  { %v2871_v10 = vmul.f32 %v4189_v9, %v2855_v46 }
0x11c7   :  { %v2877_v12 = vmul.f32 %v2876_v8, %v2871_v10 }
0x11c8   :  { %v4191_v14 = vpop.eup %4190 }
0x11c9   :  { %v2872_v29 = vmul.f32 %v4191_v14, %v4848_v32  ;;  %v2883_v15 = vadd.f32 %v2882_v11, %v2877_v12 }
0x11cb   :  { %v2878_v17 = vmul.f32 %v2876_v8, %v2872_v29  ;;  %3766 = vmatprep.mubr.msk.f32.mxu0 %vm172_vm2, %v2883_v15 }
0x11cd   :  { %v2884_v18 = vadd.f32 %v2882_v11, %v2878_v17 }
0x11cf   :  { %3767 = vmatmul.mubr.msk.f32.vlgmr.msra.gmra.mrb[36].mxu0 %vm172_vm2, %v2884_v18 }
0x11d0   :  { %4042 = vmatpush3.bf16.msra.mxu0 %v4039_v51 }
0x11d1   :  { %4044 = vmatprep.subr.bf16.mxu0 %v4043_v55 }
0x11d4   :  { %4046 = vmatpush3.bf16.msra.mxu0 %v4043_v55 }
0x12a2   :  { %v3768_v20 = vpop.f32.mrb[36].mxu0 }
0x12a3   :  { %v2973_v21 = vadd.f32 %v3768_v20, %v3315_v40  ;;  %v2967_v22 = vpop.f32.mrb[37].mxu0 }
0x12a4   :  { %v2968_v27 = vadd.f32 %v3315_v40, %v2967_v22 }
0x12a5   :  { %v2977_v23 = vmax.f32 %v2973_v21, 0.0 }
0x12a6   :  { %v2976_v30 = vmax.f32 %v2968_v27, 0.0 }
0x12a8   :  { %3801 = vmatprep.mubr.f32.mxu1 %v2976_v30 }
0x12a9   :  { %3802 = vmatmul.mubr.f32.vlgmr.msra.gmra.mrb[18].mxu1 %v2977_v23 }
0x137c   :  { %v3803_v32 = vpop.f32.mrb[18].mxu1 }
0x137d   :  { %v3071_v46 = vadd.f32 %v3803_v32, %v3334_v26  ;;  %v3065_v33 = vpop.f32.mrb[19].mxu1 }
0x137e   :  { %v3066_v34 = vadd.f32 %v3334_v26, %v3065_v33 }
0x137f   :  { %v3075_v59 = vadd.f32 %v3071_v46, %v2884_v18 }
0x1380   :  { %v3074_v58 = vadd.f32 %v3066_v34, %v2883_v15 }
0x1381   :  { %v3079_v35 = vsel %vm172_vm2, %v3075_v59, 0.0 }
0x1382   :  { %3080 = vadd.xlane.f32.xlu0 %v3079_v35  ;;  %v3076_v36 = vsel %vm172_vm2, %v3074_v58, 0.0 }
0x1383   :  { %3077 = vadd.xlane.f32.xlu1 %v3076_v36 }
0x140f   :  { %v3081_v37 = vpop.xlane.xlu0 %3080 }
0x1410   :  { %v3083_v38 = vmul.f32 0.03125, %v3081_v37  ;;  %v3078_v13 = vpop.xlane.xlu1 %3077 }
0x1411   :  { %v3082_v16 = vmul.f32 0.03125, %v3078_v13 }
0x1412   :  { %v3085_v39 = vsub.f32 %v3075_v59, %v3083_v38 }
0x1413   :  { %v3084_v41 = vsub.f32 %v3074_v58, %v3082_v16 }
0x1414   :  { %v3087_v42 = vmul.f32 %v3085_v39, %v3085_v39 }
0x1415   :  { %v3086_v45 = vmul.f32 %v3084_v41, %v3084_v41 }
0x1416   :  { %v3091_v49 = vsel %vm172_vm2, %v3087_v42, 0.0 }
0x1417   :  { %3092 = vadd.xlane.f32.xlu0 %v3091_v49  ;;  %v3088_v3 = vsel %vm172_vm2, %v3086_v45, 0.0 }
0x1418   :  { %3089 = vadd.xlane.f32.xlu1 %v3088_v3 }
0x14a4   :  { %v3093_v56 = vpop.xlane.xlu0 %3092 }
0x14a5   :  { %v3095_v57 = vmul.f32 0.03125, %v3093_v56  ;;  %v3090_v60 = vpop.xlane.xlu1 %3089 }
0x14a6   :  { %v3094_v31 = vmul.f32 0.03125, %v3090_v60 }
0x14a7   :  { %v3097_v61 = vadd.f32 1e-05, %v3095_v57 }
0x14a8   :  { %v3096_v25 = vadd.f32 1e-05, %v3094_v31 }
0x14a9   :  { %4192 = vrsqrt.f32 %v3097_v61 }
0x14aa   :  { %4194 = vrsqrt.f32 %v3096_v25 }
0x14b3   :  { %v4193_v53 = vpop.eup %4192 }
0x14b4   :  { %v4195_v62 = vpop.eup %4194  ;;  %v3101_v63 = vmul.f32 %v4193_v53, %v3085_v39 }
0x14b5   :  { %v3100_v1 = vmul.f32 %v4195_v62, %v3084_v41 }
0x14b6   :  { %v3107_v5 = vmul.f32 %v3105_v24, %v3101_v63 }
0x14b7   :  { %v3106_v6 = vmul.f32 %v3105_v24, %v3100_v1 }
0x14b8   :  { %v3113_v8 = vadd.f32 %v3111_v2, %v3107_v5 }
0x14b9   :  { %v3112_v7 = vadd.f32 %v3111_v2, %v3106_v6 }
0x14bb   :  { %3812 = vmatprep.mubr.msk.f32.mxu0 %vm172_vm2, %v3112_v7 }
0x14bc   :  { %3813 = vmatmul.mubr.msk.f32.vlgmr.msra.gmra.mrb[38].mxu0 %vm172_vm2, %v3113_v8 }
0x158f   :  { %v3814_v9 = vpop.f32.mrb[38].mxu0 }
0x1590   :  { %v3203_v10 = vadd.f32 %v3814_v9, %v3335_v47  ;;  %v3197_v11 = vpop.f32.mrb[39].mxu0 }
0x1591   :  { %v3198_v12 = vadd.f32 %v3335_v47, %v3197_v11 }
0x1592   :  { %3207 = vst [vmem:[%s4974_s12 + $0x8] sm:$0xff] %v3203_v10 }
0x1593   :  { %3206 = vst [vmem:[%s4974_s12] sm:$0xff] %v3198_v12 }
0x1594   :  { %3212 = vsyncpa [#allocation4], 1 }
0x1595   :  { %3213 = vsyncpa [#allocation6], 1 }

</bundles_post_ra>
